<compile_context>
chip_gen: v5e
topology: v5e:2x2
jax: 0.10.0
libtpu: 0.0.40
codegen_flags: <defaults>
</compile_context>

<pallas_src>
import functools

import jax
import jax.numpy as jnp
from jax.experimental import pallas as pl
from jax.experimental.pallas import tpu as pltpu


def _lane_shift(x, off):
    """y[..., m] = x[..., (m + off) % M] for a static integer offset.

    Static jnp.roll lowers to two lane slices + one lane concatenation (the same
    relayout class as a single XLU rotate). Wrap-around lanes are always
    overwritten by the reflection-border masks in the caller.
    """
    m = x.shape[-1]
    if off % m == 0:
        return x
    return jnp.roll(x, -off, axis=-1)


def _conv_lrelu_stats_kernel(idx_ref, x_ref, w_ref, b_ref, y_ref, stats_ref,
                             *, K: int, H: int, W: int, leak: float):
    """Per-image fused ReflectionPad + Conv2d + bias + LeakyReLU, plus
    per-channel sum / sum-of-squares for the two-pass BatchNorm.

    idx_ref:   (2, M) int32     row 0 = m % W (col), row 1 = m // W (row)
    x_ref:     (1, Cin, M) f32  flattened NCHW image (lane-dense)
    w_ref:     (Cout, K*K*Cin)  conv weights, rows ordered (kh, kw, ci)
    b_ref:     (Cout, 1)        conv bias
    y_ref:     (1, Cout, M)     pre-BN activations (lane-dense store)
    stats_ref: (1, Cout, 2)     per-image [sum, sumsq] per channel
    """
    Cin = x_ref.shape[1]
    Cout = w_ref.shape[0]
    M = H * W
    p = (K - 1) // 2
    offsets = tuple(range(-p, p + 1))

    x = x_ref[0]                                        # (Cin, M) f32

    # Reflection-border masks (hoisted, broadcast once).
    col = jnp.broadcast_to(idx_ref[0:1, :], (Cin, M))
    row = jnp.broadcast_to(idx_ref[1:2, :], (Cin, M))
    col_lo = col == 0
    col_hi = col == W - 1
    row_lo = row == 0
    row_hi = row == H - 1

    # All (2p+1)^2 lane-shifted copies of x (shift by dh*W + dw).
    shifted = {(dh, dw): _lane_shift(x, dh * W + dw)
               for dh in offsets for dw in offsets}

    def window(dh, dw):
        """x[ci, reflect(h+dh), reflect(w+dw)] for every output pixel m=(h,w)."""
        out = shifted[(dh, dw)]
        if dw != 0:
            wmask = col_lo if dw < 0 else col_hi
            out = jnp.where(wmask, shifted[(dh, -dw)], out)
        if dh != 0:
            hmask = row_lo if dh < 0 else row_hi
            alt = shifted[(-dh, dw)]
            if dw != 0:
                alt = jnp.where(wmask, shifted[(-dh, -dw)], alt)
            out = jnp.where(hmask, alt, out)
        return out

    # Conv as VPU outer-product FMAs: acc[co, m] += w[co, j] * patch[j, m].
    # (MXU skipped on purpose: contraction depth K*K*Cin is tiny -- see header.)
    acc = jnp.zeros((Cout, M), jnp.float32)
    j = 0
    for dh in offsets:
        for dw in offsets:
            win = window(dh, dw)                        # (Cin, M)
            for ci in range(Cin):
                acc = acc + w_ref[:, j:j + 1] * win[ci:ci + 1, :]
                j += 1

    acc = acc + b_ref[...]                              # conv bias (Cout, 1)
    acc = jnp.where(acc > 0, acc, leak * acc)           # LeakyReLU(0.2)

    y_ref[0] = acc.astype(y_ref.dtype)                  # lane-dense (Cout, M) store

    # Per-channel partial BN stats: lane-axis reductions (XLU slot).
    stats_ref[0, :, 0:1] = jnp.sum(acc, axis=1, keepdims=True)
    stats_ref[0, :, 1:2] = jnp.sum(acc * acc, axis=1, keepdims=True)


def _bn_affine_kernel(y_ref, scale_ref, shift_ref, o_ref):
    """out = y * scale + shift, per channel (BatchNorm normalize+affine)."""
    o_ref[0] = y_ref[0] * scale_ref[...] + shift_ref[...]


def single_convblock_forward(x_nchw, weight, bias, gamma, beta, *,
                             ksize: int = 3, stride: int = 1,
                             leak: float = 0.2, eps: float = 1e-5):
    """Single_ConvBlock forward (instance_normalization=0 path).

    x_nchw: (N, Cin, H, W) f32; weight: (Cout, Cin, K, K) f32 (PyTorch layout);
    bias/gamma/beta: (Cout,). Returns (N, Cout, H, W) f32.
    """
    if stride != 1:
        raise NotImplementedError("stride != 1 not implemented")
    N, Cin, H, W = x_nchw.shape
    Cout = weight.shape[0]
    K = ksize
    p = (K - 1) // 2
    if K != 2 * p + 1 or p > 1:
        # TODO(synk): multi-pixel reflection halo (K > 3) needs per-ring masks.
        raise NotImplementedError("only odd kernel sizes 1 and 3 supported")
    M = H * W

    # NCHW memory is already (channel, contiguous H*W): these reshapes are free
    # metadata -- no wrapper transpose / pad / extra HBM passes.
    x_flat = x_nchw.reshape(N, Cin, M).astype(jnp.float32)
    w_flat = (jnp.transpose(weight, (0, 2, 3, 1))        # (Cout, K, K, Cin)
              .reshape(Cout, K * K * Cin).astype(jnp.float32))
    b_col = bias.reshape(Cout, 1).astype(jnp.float32)

    # Static column/row index of each flattened pixel (for reflection masks).
    m_idx = jnp.arange(M, dtype=jnp.int32)
    idx = jnp.stack([m_idx % W, m_idx // W], axis=0)     # (2, M) int32

    kern1 = functools.partial(_conv_lrelu_stats_kernel, K=K, H=H, W=W, leak=leak)
    conv_flops = 2 * N * M * K * K * Cin * Cout
    pass1_bytes = 4 * (N * Cin * M + N * Cout * M + N * Cout * 2
                       + Cout * K * K * Cin + Cout + 2 * M)

    # Pass 1: conv + bias + LeakyReLU, plus per-image per-channel sum/sumsq.
    y, stats = pl.pallas_call(
        kern1,
        grid=(N,),                                       # one image per grid step
        in_specs=[
            pl.BlockSpec((2, M), lambda n: (0, 0)),              # idx
            pl.BlockSpec((1, Cin, M), lambda n: (n, 0, 0)),      # x
            pl.BlockSpec((Cout, K * K * Cin), lambda n: (0, 0)), # weights
            pl.BlockSpec((Cout, 1), lambda n: (0, 0)),           # bias
        ],
        out_specs=(
            pl.BlockSpec((1, Cout, M), lambda n: (n, 0, 0)),     # pre-BN y
            pl.BlockSpec((1, Cout, 2), lambda n: (n, 0, 0)),     # stats
        ),
        out_shape=(
            jax.ShapeDtypeStruct((N, Cout, M), jnp.float32),
            jax.ShapeDtypeStruct((N, Cout, 2), jnp.float32),
        ),
        compiler_params=pltpu.CompilerParams(
            dimension_semantics=("parallel",),           # megacore over batch
            vmem_limit_bytes=32 * 1024 * 1024),          # explicit; blocks << 1 MiB
        cost_estimate=pl.CostEstimate(flops=conv_flops, transcendentals=0,
                                      bytes_accessed=pass1_bytes),
    )(idx, x_flat, w_flat, b_col)

    # Tiny cross-image reduction (2*N*Cout floats) + fused BN scale/shift.
    count = float(N * M)
    mean = stats[:, :, 0].sum(axis=0) / count                    # (Cout,)
    var = stats[:, :, 1].sum(axis=0) / count - mean * mean
    var = jnp.maximum(var, 0.0)          # guard E[x^2]-E[x]^2 cancellation
    inv = jax.lax.rsqrt(var + eps)
    g = gamma.astype(jnp.float32)
    scale = (g * inv).reshape(Cout, 1)
    shift = (beta.astype(jnp.float32) - mean * g * inv).reshape(Cout, 1)

    # Pass 2: apply the per-channel affine normalization (lane-dense blocks).
    out = pl.pallas_call(
        _bn_affine_kernel,
        grid=(N,),
        in_specs=[
            pl.BlockSpec((1, Cout, M), lambda n: (n, 0, 0)),
            pl.BlockSpec((Cout, 1), lambda n: (0, 0)),
            pl.BlockSpec((Cout, 1), lambda n: (0, 0)),
        ],
        out_specs=pl.BlockSpec((1, Cout, M), lambda n: (n, 0, 0)),
        out_shape=jax.ShapeDtypeStruct((N, Cout, M), jnp.float32),
        compiler_params=pltpu.CompilerParams(
            dimension_semantics=("parallel",),
            vmem_limit_bytes=32 * 1024 * 1024),
        cost_estimate=pl.CostEstimate(flops=2 * N * Cout * M, transcendentals=0,
                                      bytes_accessed=4 * (2 * N * Cout * M + 4 * Cout)),
    )(y, scale, shift)

    # Dropout2d: identity in eval mode / drop_prob == 0.
    return out.reshape(N, Cout, H, W)


def _reference(x, weight, bias, gamma, beta, *, ksize=3, leak=0.2, eps=1e-5):
    """Pure-JAX/XLA reference for the same forward pass (training-mode BN)."""
    p = (ksize - 1) // 2
    xp = jnp.pad(x, ((0, 0), (0, 0), (p, p), (p, p)), mode="reflect") if p else x
    y = jax.lax.conv_general_dilated(
        xp, weight, window_strides=(1, 1), padding="VALID",
        dimension_numbers=("NCHW", "OIHW", "NCHW"),
        precision=jax.lax.Precision.HIGHEST)
    y = y + bias.reshape(1, -1, 1, 1)
    y = jnp.where(y > 0, y, leak * y)
    mean = jnp.mean(y, axis=(0, 2, 3), keepdims=True)
    var = jnp.mean(jnp.square(y - mean), axis=(0, 2, 3), keepdims=True)
    y = (y - mean) * jax.lax.rsqrt(var + eps)
    return y * gamma.reshape(1, -1, 1, 1) + beta.reshape(1, -1, 1, 1)


if __name__ == "__main__":
    # Module config: in_chans=4, out_chans=8, kernal_size=3, stride=1,
    # pad='reflection', bias=True, act_fun='LeakyReLU', drop_prob=0.0,
    # instance_normalization=0.
    N, Cin, Cout, H, W, K = 2, 4, 8, 16, 16, 3

    key = jax.random.PRNGKey(0)
    kx, kw, kb = jax.random.split(key, 3)
    x = jax.random.normal(kx, (N, Cin, H, W), dtype=jnp.float32)

    fan_in = Cin * K * K
    weight = jax.random.uniform(kw, (Cout, Cin, K, K), jnp.float32,
                                minval=-1.0, maxval=1.0) / (fan_in ** 0.5)
    bias = jax.random.uniform(kb, (Cout,), jnp.float32,
                              minval=-1.0, maxval=1.0) / (fan_in ** 0.5)
    gamma = jnp.ones((Cout,), jnp.float32)   # BatchNorm2d affine defaults
    beta = jnp.zeros((Cout,), jnp.float32)

    fwd = jax.jit(functools.partial(single_convblock_forward, ksize=K))
    out = jax.block_until_ready(fwd(x, weight, bias, gamma, beta))

    ref = _reference(x, weight, bias, gamma, beta, ksize=K)
    assert out.shape == (N, Cout, H, W), out.shape
    err = float(jnp.max(jnp.abs(out - ref)))
    assert jnp.allclose(out, ref, atol=5e-4, rtol=5e-4), f"max |diff| = {err}"

    print("KERNEL_OK")
</pallas_src>

<mosaic_0001>
module attributes {stable_mosaic.version = 11 : i64} {
  func.func @_bn_affine_kernel(%arg0: i32, %arg1: memref<1x8x256xf32, #tpu.memory_space<vmem>>, %arg2: memref<8x1xf32, #tpu.memory_space<vmem>>, %arg3: memref<8x1xf32, #tpu.memory_space<vmem>>, %arg4: memref<1x8x256xf32, #tpu.memory_space<vmem>>) attributes {dimension_semantics = [#tpu.dimension_semantics<parallel>], iteration_bounds = array<i64: 2>, scalar_prefetch = 0 : i64, scratch_operands = 0 : i64, tpu.core_type = #tpu.core_type<tc>, window_params = [{transform_indices = @transform_0, window_bounds = array<i64: 1, 8, 256>}, {pipeline_mode = #tpu.pipeline_mode<synchronous>, transform_indices = @transform_1, window_bounds = array<i64: 8, 1>}, {pipeline_mode = #tpu.pipeline_mode<synchronous>, transform_indices = @transform_2, window_bounds = array<i64: 8, 1>}, {transform_indices = @transform_3, window_bounds = array<i64: 1, 8, 256>}]} {
    %c0 = arith.constant 0 : index
    %c0_0 = arith.constant 0 : index
    %c0_1 = arith.constant 0 : index
    %0 = vector.load %arg1[%c0, %c0_0, %c0_1] : memref<1x8x256xf32, #tpu.memory_space<vmem>>, vector<1x8x256xf32>
    %1 = vector.shape_cast %0 : vector<1x8x256xf32> to vector<8x256xf32>
    %c0_2 = arith.constant 0 : index
    %c0_3 = arith.constant 0 : index
    %2 = vector.load %arg2[%c0_2, %c0_3] : memref<8x1xf32, #tpu.memory_space<vmem>>, vector<8x1xf32>
    %3 = vector.broadcast %2 : vector<8x1xf32> to vector<8x256xf32>
    %4 = arith.mulf %1, %3 : vector<8x256xf32>
    %c0_4 = arith.constant 0 : index
    %c0_5 = arith.constant 0 : index
    %5 = vector.load %arg3[%c0_4, %c0_5] : memref<8x1xf32, #tpu.memory_space<vmem>>, vector<8x1xf32>
    %6 = vector.broadcast %5 : vector<8x1xf32> to vector<8x256xf32>
    %7 = arith.addf %4, %6 : vector<8x256xf32>
    %c0_6 = arith.constant 0 : index
    %c0_7 = arith.constant 0 : index
    %c0_8 = arith.constant 0 : index
    %8 = vector.load %arg4[%c0_6, %c0_7, %c0_8] : memref<1x8x256xf32, #tpu.memory_space<vmem>>, vector<1x8x256xf32>
    %9 = vector.shape_cast %8 : vector<1x8x256xf32> to vector<8x256xf32>
    %10 = vector.shape_cast %7 : vector<8x256xf32> to vector<1x8x256xf32>
    tpu.vector_store %arg4[%c0_6, %c0_7, %c0_8], %10 {strides = array<i32>} : memref<1x8x256xf32, #tpu.memory_space<vmem>>, vector<1x8x256xf32>,
    return
  }
  func.func @transform_0(%arg0: i32) -> (i32, i32, i32) {
    %c0_i32 = arith.constant 0 : i32
    %c0_i32_0 = arith.constant 0 : i32
    %c0_i32_1 = arith.constant 0 : i32
    return %arg0, %c0_i32, %c0_i32_0 : i32, i32, i32
  }
  func.func @transform_1(%arg0: i32) -> (i32, i32) {
    %c0_i32 = arith.constant 0 : i32
    %c0_i32_0 = arith.constant 0 : i32
    %c0_i32_1 = arith.constant 0 : i32
    return %c0_i32, %c0_i32_0 : i32, i32
  }
  func.func @transform_2(%arg0: i32) -> (i32, i32) {
    %c0_i32 = arith.constant 0 : i32
    %c0_i32_0 = arith.constant 0 : i32
    %c0_i32_1 = arith.constant 0 : i32
    return %c0_i32, %c0_i32_0 : i32, i32
  }
  func.func @transform_3(%arg0: i32) -> (i32, i32, i32) {
    %c0_i32 = arith.constant 0 : i32
    %c0_i32_0 = arith.constant 0 : i32
    %c0_i32_1 = arith.constant 0 : i32
    return %arg0, %c0_i32, %c0_i32_0 : i32, i32, i32
  }
}

module attributes {stable_mosaic.version = 11 : i64} {
  func.func @_conv_lrelu_stats_kernel(%arg0: i32, %arg1: memref<2x256xi32, #tpu.memory_space<vmem>>, %arg2: memref<1x4x256xf32, #tpu.memory_space<vmem>>, %arg3: memref<8x36xf32, #tpu.memory_space<vmem>>, %arg4: memref<8x1xf32, #tpu.memory_space<vmem>>, %arg5: memref<1x8x256xf32, #tpu.memory_space<vmem>>, %arg6: memref<1x8x2xf32, #tpu.memory_space<vmem>>) attributes {dimension_semantics = [#tpu.dimension_semantics<parallel>], iteration_bounds = array<i64: 2>, scalar_prefetch = 0 : i64, scratch_operands = 0 : i64, tpu.core_type = #tpu.core_type<tc>, window_params = [{pipeline_mode = #tpu.pipeline_mode<synchronous>, transform_indices = @transform_0, window_bounds = array<i64: 2, 256>}, {transform_indices = @transform_1, window_bounds = array<i64: 1, 4, 256>}, {pipeline_mode = #tpu.pipeline_mode<synchronous>, transform_indices = @transform_2, window_bounds = array<i64: 8, 36>}, {pipeline_mode = #tpu.pipeline_mode<synchronous>, transform_indices = @transform_3, window_bounds = array<i64: 8, 1>}, {transform_indices = @transform_4, window_bounds = array<i64: 1, 8, 256>}, {transform_indices = @transform_5, window_bounds = array<i64: 1, 8, 2>}]} {
    %c0 = arith.constant 0 : index
    %c0_0 = arith.constant 0 : index
    %c0_1 = arith.constant 0 : index
    %0 = vector.load %arg2[%c0, %c0_0, %c0_1] : memref<1x4x256xf32, #tpu.memory_space<vmem>>, vector<1x4x256xf32>
    %1 = vector.shape_cast %0 : vector<1x4x256xf32> to vector<4x256xf32>
    %c0_2 = arith.constant 0 : index
    %c0_3 = arith.constant 0 : index
    %2 = vector.load %arg1[%c0_2, %c0_3] : memref<2x256xi32, #tpu.memory_space<vmem>>, vector<1x256xi32>
    %3 = vector.shape_cast %2 : vector<1x256xi32> to vector<1x256xi32>
    %4 = vector.broadcast %3 : vector<1x256xi32> to vector<4x256xi32>
    %c1 = arith.constant 1 : index
    %c0_4 = arith.constant 0 : index
    %5 = vector.load %arg1[%c1, %c0_4] : memref<2x256xi32, #tpu.memory_space<vmem>>, vector<1x256xi32>
    %6 = vector.shape_cast %5 : vector<1x256xi32> to vector<1x256xi32>
    %7 = vector.broadcast %6 : vector<1x256xi32> to vector<4x256xi32>
    %c0_i32 = arith.constant 0 : i32
    %8 = vector.broadcast %c0_i32 : i32 to vector<4x256xi32>
    %9 = arith.cmpi eq, %4, %8 : vector<4x256xi32>
    %c15_i32 = arith.constant 15 : i32
    %10 = vector.broadcast %c15_i32 : i32 to vector<4x256xi32>
    %11 = arith.cmpi eq, %4, %10 : vector<4x256xi32>
    %c0_i32_5 = arith.constant 0 : i32
    %12 = vector.broadcast %c0_i32_5 : i32 to vector<4x256xi32>
    %13 = arith.cmpi eq, %7, %12 : vector<4x256xi32>
    %c15_i32_6 = arith.constant 15 : i32
    %14 = vector.broadcast %c15_i32_6 : i32 to vector<4x256xi32>
    %15 = arith.cmpi eq, %7, %14 : vector<4x256xi32>
    %16 = vector.extract_strided_slice %1 {offsets = [0, 239], sizes = [4, 17], strides = [1, 1]} : vector<4x256xf32> to vector<4x17xf32>
    %17 = vector.extract_strided_slice %1 {offsets = [0, 0], sizes = [4, 239], strides = [1, 1]} : vector<4x256xf32> to vector<4x239xf32>
    %18 = tpu.concatenate %16, %17 in 1 : vector<4x17xf32>, vector<4x239xf32> -> vector<4x256xf32>
    %19 = vector.extract_strided_slice %1 {offsets = [0, 240], sizes = [4, 16], strides = [1, 1]} : vector<4x256xf32> to vector<4x16xf32>
    %20 = vector.extract_strided_slice %1 {offsets = [0, 0], sizes = [4, 240], strides = [1, 1]} : vector<4x256xf32> to vector<4x240xf32>
    %21 = tpu.concatenate %19, %20 in 1 : vector<4x16xf32>, vector<4x240xf32> -> vector<4x256xf32>
    %22 = vector.extract_strided_slice %1 {offsets = [0, 241], sizes = [4, 15], strides = [1, 1]} : vector<4x256xf32> to vector<4x15xf32>
    %23 = vector.extract_strided_slice %1 {offsets = [0, 0], sizes = [4, 241], strides = [1, 1]} : vector<4x256xf32> to vector<4x241xf32>
    %24 = tpu.concatenate %22, %23 in 1 : vector<4x15xf32>, vector<4x241xf32> -> vector<4x256xf32>
    %25 = vector.extract_strided_slice %1 {offsets = [0, 255], sizes = [4, 1], strides = [1, 1]} : vector<4x256xf32> to vector<4x1xf32>
    %26 = vector.extract_strided_slice %1 {offsets = [0, 0], sizes = [4, 255], strides = [1, 1]} : vector<4x256xf32> to vector<4x255xf32>
    %27 = tpu.concatenate %25, %26 in 1 : vector<4x1xf32>, vector<4x255xf32> -> vector<4x256xf32>
    %28 = vector.extract_strided_slice %1 {offsets = [0, 1], sizes = [4, 255], strides = [1, 1]} : vector<4x256xf32> to vector<4x255xf32>
    %29 = vector.extract_strided_slice %1 {offsets = [0, 0], sizes = [4, 1], strides = [1, 1]} : vector<4x256xf32> to vector<4x1xf32>
    %30 = tpu.concatenate %28, %29 in 1 : vector<4x255xf32>, vector<4x1xf32> -> vector<4x256xf32>
    %31 = vector.extract_strided_slice %1 {offsets = [0, 15], sizes = [4, 241], strides = [1, 1]} : vector<4x256xf32> to vector<4x241xf32>
    %32 = vector.extract_strided_slice %1 {offsets = [0, 0], sizes = [4, 15], strides = [1, 1]} : vector<4x256xf32> to vector<4x15xf32>
    %33 = tpu.concatenate %31, %32 in 1 : vector<4x241xf32>, vector<4x15xf32> -> vector<4x256xf32>
    %34 = vector.extract_strided_slice %1 {offsets = [0, 16], sizes = [4, 240], strides = [1, 1]} : vector<4x256xf32> to vector<4x240xf32>
    %35 = vector.extract_strided_slice %1 {offsets = [0, 0], sizes = [4, 16], strides = [1, 1]} : vector<4x256xf32> to vector<4x16xf32>
    %36 = tpu.concatenate %34, %35 in 1 : vector<4x240xf32>, vector<4x16xf32> -> vector<4x256xf32>
    %37 = vector.extract_strided_slice %1 {offsets = [0, 17], sizes = [4, 239], strides = [1, 1]} : vector<4x256xf32> to vector<4x239xf32>
    %38 = vector.extract_strided_slice %1 {offsets = [0, 0], sizes = [4, 17], strides = [1, 1]} : vector<4x256xf32> to vector<4x17xf32>
    %39 = tpu.concatenate %37, %38 in 1 : vector<4x239xf32>, vector<4x17xf32> -> vector<4x256xf32>
    %cst = arith.constant 0.000000e+00 : f32
    %40 = vector.broadcast %cst : f32 to vector<8x256xf32>
    %41 = arith.select %9, %24, %18 : vector<4x256xi1>, vector<4x256xf32>
    %42 = arith.select %9, %39, %33 : vector<4x256xi1>, vector<4x256xf32>
    %43 = arith.select %13, %42, %41 : vector<4x256xi1>, vector<4x256xf32>
    %c0_7 = arith.constant 0 : index
    %c0_8 = arith.constant 0 : index
    %44 = vector.load %arg3[%c0_7, %c0_8] : memref<8x36xf32, #tpu.memory_space<vmem>>, vector<8x1xf32>
    %45 = vector.extract_strided_slice %43 {offsets = [0, 0], sizes = [1, 256], strides = [1, 1]} : vector<4x256xf32> to vector<1x256xf32>
    %46 = vector.broadcast %44 : vector<8x1xf32> to vector<8x256xf32>
    %47 = vector.broadcast %45 : vector<1x256xf32> to vector<8x256xf32>
    %48 = arith.mulf %46, %47 : vector<8x256xf32>
    %49 = arith.addf %40, %48 : vector<8x256xf32>
    %c0_9 = arith.constant 0 : index
    %c1_10 = arith.constant 1 : index
    %50 = vector.load %arg3[%c0_9, %c1_10] : memref<8x36xf32, #tpu.memory_space<vmem>>, vector<8x1xf32>
    %51 = vector.extract_strided_slice %43 {offsets = [1, 0], sizes = [1, 256], strides = [1, 1]} : vector<4x256xf32> to vector<1x256xf32>
    %52 = vector.broadcast %50 : vector<8x1xf32> to vector<8x256xf32>
    %53 = vector.broadcast %51 : vector<1x256xf32> to vector<8x256xf32>
    %54 = arith.mulf %52, %53 : vector<8x256xf32>
    %55 = arith.addf %49, %54 : vector<8x256xf32>
    %c0_11 = arith.constant 0 : index
    %c2 = arith.constant 2 : index
    %56 = vector.load %arg3[%c0_11, %c2] : memref<8x36xf32, #tpu.memory_space<vmem>>, vector<8x1xf32>
    %57 = vector.extract_strided_slice %43 {offsets = [2, 0], sizes = [1, 256], strides = [1, 1]} : vector<4x256xf32> to vector<1x256xf32>
    %58 = vector.broadcast %56 : vector<8x1xf32> to vector<8x256xf32>
    %59 = vector.broadcast %57 : vector<1x256xf32> to vector<8x256xf32>
    %60 = arith.mulf %58, %59 : vector<8x256xf32>
    %61 = arith.addf %55, %60 : vector<8x256xf32>
    %c0_12 = arith.constant 0 : index
    %c3 = arith.constant 3 : index
    %62 = vector.load %arg3[%c0_12, %c3] : memref<8x36xf32, #tpu.memory_space<vmem>>, vector<8x1xf32>
    %63 = vector.extract_strided_slice %43 {offsets = [3, 0], sizes = [1, 256], strides = [1, 1]} : vector<4x256xf32> to vector<1x256xf32>
    %64 = vector.broadcast %62 : vector<8x1xf32> to vector<8x256xf32>
    %65 = vector.broadcast %63 : vector<1x256xf32> to vector<8x256xf32>
    %66 = arith.mulf %64, %65 : vector<8x256xf32>
    %67 = arith.addf %61, %66 : vector<8x256xf32>
    %68 = arith.select %13, %36, %21 : vector<4x256xi1>, vector<4x256xf32>
    %c0_13 = arith.constant 0 : index
    %c4 = arith.constant 4 : index
    %69 = vector.load %arg3[%c0_13, %c4] : memref<8x36xf32, #tpu.memory_space<vmem>>, vector<8x1xf32>
    %70 = vector.extract_strided_slice %68 {offsets = [0, 0], sizes = [1, 256], strides = [1, 1]} : vector<4x256xf32> to vector<1x256xf32>
    %71 = vector.broadcast %69 : vector<8x1xf32> to vector<8x256xf32>
    %72 = vector.broadcast %70 : vector<1x256xf32> to vector<8x256xf32>
    %73 = arith.mulf %71, %72 : vector<8x256xf32>
    %74 = arith.addf %67, %73 : vector<8x256xf32>
    %c0_14 = arith.constant 0 : index
    %c5 = arith.constant 5 : index
    %75 = vector.load %arg3[%c0_14, %c5] : memref<8x36xf32, #tpu.memory_space<vmem>>, vector<8x1xf32>
    %76 = vector.extract_strided_slice %68 {offsets = [1, 0], sizes = [1, 256], strides = [1, 1]} : vector<4x256xf32> to vector<1x256xf32>
    %77 = vector.broadcast %75 : vector<8x1xf32> to vector<8x256xf32>
    %78 = vector.broadcast %76 : vector<1x256xf32> to vector<8x256xf32>
    %79 = arith.mulf %77, %78 : vector<8x256xf32>
    %80 = arith.addf %74, %79 : vector<8x256xf32>
    %c0_15 = arith.constant 0 : index
    %c6 = arith.constant 6 : index
    %81 = vector.load %arg3[%c0_15, %c6] : memref<8x36xf32, #tpu.memory_space<vmem>>, vector<8x1xf32>
    %82 = vector.extract_strided_slice %68 {offsets = [2, 0], sizes = [1, 256], strides = [1, 1]} : vector<4x256xf32> to vector<1x256xf32>
    %83 = vector.broadcast %81 : vector<8x1xf32> to vector<8x256xf32>
    %84 = vector.broadcast %82 : vector<1x256xf32> to vector<8x256xf32>
    %85 = arith.mulf %83, %84 : vector<8x256xf32>
    %86 = arith.addf %80, %85 : vector<8x256xf32>
    %c0_16 = arith.constant 0 : index
    %c7 = arith.constant 7 : index
    %87 = vector.load %arg3[%c0_16, %c7] : memref<8x36xf32, #tpu.memory_space<vmem>>, vector<8x1xf32>
    %88 = vector.extract_strided_slice %68 {offsets = [3, 0], sizes = [1, 256], strides = [1, 1]} : vector<4x256xf32> to vector<1x256xf32>
    %89 = vector.broadcast %87 : vector<8x1xf32> to vector<8x256xf32>
    %90 = vector.broadcast %88 : vector<1x256xf32> to vector<8x256xf32>
    %91 = arith.mulf %89, %90 : vector<8x256xf32>
    %92 = arith.addf %86, %91 : vector<8x256xf32>
    %93 = arith.select %11, %18, %24 : vector<4x256xi1>, vector<4x256xf32>
    %94 = arith.select %11, %33, %39 : vector<4x256xi1>, vector<4x256xf32>
    %95 = arith.select %13, %94, %93 : vector<4x256xi1>, vector<4x256xf32>
    %c0_17 = arith.constant 0 : index
    %c8 = arith.constant 8 : index
    %96 = vector.load %arg3[%c0_17, %c8] : memref<8x36xf32, #tpu.memory_space<vmem>>, vector<8x1xf32>
    %97 = vector.extract_strided_slice %95 {offsets = [0, 0], sizes = [1, 256], strides = [1, 1]} : vector<4x256xf32> to vector<1x256xf32>
    %98 = vector.broadcast %96 : vector<8x1xf32> to vector<8x256xf32>
    %99 = vector.broadcast %97 : vector<1x256xf32> to vector<8x256xf32>
    %100 = arith.mulf %98, %99 : vector<8x256xf32>
    %101 = arith.addf %92, %100 : vector<8x256xf32>
    %c0_18 = arith.constant 0 : index
    %c9 = arith.constant 9 : index
    %102 = vector.load %arg3[%c0_18, %c9] : memref<8x36xf32, #tpu.memory_space<vmem>>, vector<8x1xf32>
    %103 = vector.extract_strided_slice %95 {offsets = [1, 0], sizes = [1, 256], strides = [1, 1]} : vector<4x256xf32> to vector<1x256xf32>
    %104 = vector.broadcast %102 : vector<8x1xf32> to vector<8x256xf32>
    %105 = vector.broadcast %103 : vector<1x256xf32> to vector<8x256xf32>
    %106 = arith.mulf %104, %105 : vector<8x256xf32>
    %107 = arith.addf %101, %106 : vector<8x256xf32>
    %c0_19 = arith.constant 0 : index
    %c10 = arith.constant 10 : index
    %108 = vector.load %arg3[%c0_19, %c10] : memref<8x36xf32, #tpu.memory_space<vmem>>, vector<8x1xf32>
    %109 = vector.extract_strided_slice %95 {offsets = [2, 0], sizes = [1, 256], strides = [1, 1]} : vector<4x256xf32> to vector<1x256xf32>
    %110 = vector.broadcast %108 : vector<8x1xf32> to vector<8x256xf32>
    %111 = vector.broadcast %109 : vector<1x256xf32> to vector<8x256xf32>
    %112 = arith.mulf %110, %111 : vector<8x256xf32>
    %113 = arith.addf %107, %112 : vector<8x256xf32>
    %c0_20 = arith.constant 0 : index
    %c11 = arith.constant 11 : index
    %114 = vector.load %arg3[%c0_20, %c11] : memref<8x36xf32, #tpu.memory_space<vmem>>, vector<8x1xf32>
    %115 = vector.extract_strided_slice %95 {offsets = [3, 0], sizes = [1, 256], strides = [1, 1]} : vector<4x256xf32> to vector<1x256xf32>
    %116 = vector.broadcast %114 : vector<8x1xf32> to vector<8x256xf32>
    %117 = vector.broadcast %115 : vector<1x256xf32> to vector<8x256xf32>
    %118 = arith.mulf %116, %117 : vector<8x256xf32>
    %119 = arith.addf %113, %118 : vector<8x256xf32>
    %120 = arith.select %9, %30, %27 : vector<4x256xi1>, vector<4x256xf32>
    %c0_21 = arith.constant 0 : index
    %c12 = arith.constant 12 : index
    %121 = vector.load %arg3[%c0_21, %c12] : memref<8x36xf32, #tpu.memory_space<vmem>>, vector<8x1xf32>
    %122 = vector.extract_strided_slice %120 {offsets = [0, 0], sizes = [1, 256], strides = [1, 1]} : vector<4x256xf32> to vector<1x256xf32>
    %123 = vector.broadcast %121 : vector<8x1xf32> to vector<8x256xf32>
    %124 = vector.broadcast %122 : vector<1x256xf32> to vector<8x256xf32>
    %125 = arith.mulf %123, %124 : vector<8x256xf32>
    %126 = arith.addf %119, %125 : vector<8x256xf32>
    %c0_22 = arith.constant 0 : index
    %c13 = arith.constant 13 : index
    %127 = vector.load %arg3[%c0_22, %c13] : memref<8x36xf32, #tpu.memory_space<vmem>>, vector<8x1xf32>
    %128 = vector.extract_strided_slice %120 {offsets = [1, 0], sizes = [1, 256], strides = [1, 1]} : vector<4x256xf32> to vector<1x256xf32>
    %129 = vector.broadcast %127 : vector<8x1xf32> to vector<8x256xf32>
    %130 = vector.broadcast %128 : vector<1x256xf32> to vector<8x256xf32>
    %131 = arith.mulf %129, %130 : vector<8x256xf32>
    %132 = arith.addf %126, %131 : vector<8x256xf32>
    %c0_23 = arith.constant 0 : index
    %c14 = arith.constant 14 : index
    %133 = vector.load %arg3[%c0_23, %c14] : memref<8x36xf32, #tpu.memory_space<vmem>>, vector<8x1xf32>
    %134 = vector.extract_strided_slice %120 {offsets = [2, 0], sizes = [1, 256], strides = [1, 1]} : vector<4x256xf32> to vector<1x256xf32>
    %135 = vector.broadcast %133 : vector<8x1xf32> to vector<8x256xf32>
    %136 = vector.broadcast %134 : vector<1x256xf32> to vector<8x256xf32>
    %137 = arith.mulf %135, %136 : vector<8x256xf32>
    %138 = arith.addf %132, %137 : vector<8x256xf32>
    %c0_24 = arith.constant 0 : index
    %c15 = arith.constant 15 : index
    %139 = vector.load %arg3[%c0_24, %c15] : memref<8x36xf32, #tpu.memory_space<vmem>>, vector<8x1xf32>
    %140 = vector.extract_strided_slice %120 {offsets = [3, 0], sizes = [1, 256], strides = [1, 1]} : vector<4x256xf32> to vector<1x256xf32>
    %141 = vector.broadcast %139 : vector<8x1xf32> to vector<8x256xf32>
    %142 = vector.broadcast %140 : vector<1x256xf32> to vector<8x256xf32>
    %143 = arith.mulf %141, %142 : vector<8x256xf32>
    %144 = arith.addf %138, %143 : vector<8x256xf32>
    %c0_25 = arith.constant 0 : index
    %c16 = arith.constant 16 : index
    %145 = vector.load %arg3[%c0_25, %c16] : memref<8x36xf32, #tpu.memory_space<vmem>>, vector<8x1xf32>
    %146 = vector.extract_strided_slice %1 {offsets = [0, 0], sizes = [1, 256], strides = [1, 1]} : vector<4x256xf32> to vector<1x256xf32>
    %147 = vector.broadcast %145 : vector<8x1xf32> to vector<8x256xf32>
    %148 = vector.broadcast %146 : vector<1x256xf32> to vector<8x256xf32>
    %149 = arith.mulf %147, %148 : vector<8x256xf32>
    %150 = arith.addf %144, %149 : vector<8x256xf32>
    %c0_26 = arith.constant 0 : index
    %c17 = arith.constant 17 : index
    %151 = vector.load %arg3[%c0_26, %c17] : memref<8x36xf32, #tpu.memory_space<vmem>>, vector<8x1xf32>
    %152 = vector.extract_strided_slice %1 {offsets = [1, 0], sizes = [1, 256], strides = [1, 1]} : vector<4x256xf32> to vector<1x256xf32>
    %153 = vector.broadcast %151 : vector<8x1xf32> to vector<8x256xf32>
    %154 = vector.broadcast %152 : vector<1x256xf32> to vector<8x256xf32>
    %155 = arith.mulf %153, %154 : vector<8x256xf32>
    %156 = arith.addf %150, %155 : vector<8x256xf32>
    %c0_27 = arith.constant 0 : index
    %c18 = arith.constant 18 : index
    %157 = vector.load %arg3[%c0_27, %c18] : memref<8x36xf32, #tpu.memory_space<vmem>>, vector<8x1xf32>
    %158 = vector.extract_strided_slice %1 {offsets = [2, 0], sizes = [1, 256], strides = [1, 1]} : vector<4x256xf32> to vector<1x256xf32>
    %159 = vector.broadcast %157 : vector<8x1xf32> to vector<8x256xf32>
    %160 = vector.broadcast %158 : vector<1x256xf32> to vector<8x256xf32>
    %161 = arith.mulf %159, %160 : vector<8x256xf32>
    %162 = arith.addf %156, %161 : vector<8x256xf32>
    %c0_28 = arith.constant 0 : index
    %c19 = arith.constant 19 : index
    %163 = vector.load %arg3[%c0_28, %c19] : memref<8x36xf32, #tpu.memory_space<vmem>>, vector<8x1xf32>
    %164 = vector.extract_strided_slice %1 {offsets = [3, 0], sizes = [1, 256], strides = [1, 1]} : vector<4x256xf32> to vector<1x256xf32>
    %165 = vector.broadcast %163 : vector<8x1xf32> to vector<8x256xf32>
    %166 = vector.broadcast %164 : vector<1x256xf32> to vector<8x256xf32>
    %167 = arith.mulf %165, %166 : vector<8x256xf32>
    %168 = arith.addf %162, %167 : vector<8x256xf32>
    %169 = arith.select %11, %27, %30 : vector<4x256xi1>, vector<4x256xf32>
    %c0_29 = arith.constant 0 : index
    %c20 = arith.constant 20 : index
    %170 = vector.load %arg3[%c0_29, %c20] : memref<8x36xf32, #tpu.memory_space<vmem>>, vector<8x1xf32>
    %171 = vector.extract_strided_slice %169 {offsets = [0, 0], sizes = [1, 256], strides = [1, 1]} : vector<4x256xf32> to vector<1x256xf32>
    %172 = vector.broadcast %170 : vector<8x1xf32> to vector<8x256xf32>
    %173 = vector.broadcast %171 : vector<1x256xf32> to vector<8x256xf32>
    %174 = arith.mulf %172, %173 : vector<8x256xf32>
    %175 = arith.addf %168, %174 : vector<8x256xf32>
    %c0_30 = arith.constant 0 : index
    %c21 = arith.constant 21 : index
    %176 = vector.load %arg3[%c0_30, %c21] : memref<8x36xf32, #tpu.memory_space<vmem>>, vector<8x1xf32>
    %177 = vector.extract_strided_slice %169 {offsets = [1, 0], sizes = [1, 256], strides = [1, 1]} : vector<4x256xf32> to vector<1x256xf32>
    %178 = vector.broadcast %176 : vector<8x1xf32> to vector<8x256xf32>
    %179 = vector.broadcast %177 : vector<1x256xf32> to vector<8x256xf32>
    %180 = arith.mulf %178, %179 : vector<8x256xf32>
    %181 = arith.addf %175, %180 : vector<8x256xf32>
    %c0_31 = arith.constant 0 : index
    %c22 = arith.constant 22 : index
    %182 = vector.load %arg3[%c0_31, %c22] : memref<8x36xf32, #tpu.memory_space<vmem>>, vector<8x1xf32>
    %183 = vector.extract_strided_slice %169 {offsets = [2, 0], sizes = [1, 256], strides = [1, 1]} : vector<4x256xf32> to vector<1x256xf32>
    %184 = vector.broadcast %182 : vector<8x1xf32> to vector<8x256xf32>
    %185 = vector.broadcast %183 : vector<1x256xf32> to vector<8x256xf32>
    %186 = arith.mulf %184, %185 : vector<8x256xf32>
    %187 = arith.addf %181, %186 : vector<8x256xf32>
    %c0_32 = arith.constant 0 : index
    %c23 = arith.constant 23 : index
    %188 = vector.load %arg3[%c0_32, %c23] : memref<8x36xf32, #tpu.memory_space<vmem>>, vector<8x1xf32>
    %189 = vector.extract_strided_slice %169 {offsets = [3, 0], sizes = [1, 256], strides = [1, 1]} : vector<4x256xf32> to vector<1x256xf32>
    %190 = vector.broadcast %188 : vector<8x1xf32> to vector<8x256xf32>
    %191 = vector.broadcast %189 : vector<1x256xf32> to vector<8x256xf32>
    %192 = arith.mulf %190, %191 : vector<8x256xf32>
    %193 = arith.addf %187, %192 : vector<8x256xf32>
    %194 = arith.select %9, %39, %33 : vector<4x256xi1>, vector<4x256xf32>
    %195 = arith.select %9, %24, %18 : vector<4x256xi1>, vector<4x256xf32>
    %196 = arith.select %15, %195, %194 : vector<4x256xi1>, vector<4x256xf32>
    %c0_33 = arith.constant 0 : index
    %c24 = arith.constant 24 : index
    %197 = vector.load %arg3[%c0_33, %c24] : memref<8x36xf32, #tpu.memory_space<vmem>>, vector<8x1xf32>
    %198 = vector.extract_strided_slice %196 {offsets = [0, 0], sizes = [1, 256], strides = [1, 1]} : vector<4x256xf32> to vector<1x256xf32>
    %199 = vector.broadcast %197 : vector<8x1xf32> to vector<8x256xf32>
    %200 = vector.broadcast %198 : vector<1x256xf32> to vector<8x256xf32>
    %201 = arith.mulf %199, %200 : vector<8x256xf32>
    %202 = arith.addf %193, %201 : vector<8x256xf32>
    %c0_34 = arith.constant 0 : index
    %c25 = arith.constant 25 : index
    %203 = vector.load %arg3[%c0_34, %c25] : memref<8x36xf32, #tpu.memory_space<vmem>>, vector<8x1xf32>
    %204 = vector.extract_strided_slice %196 {offsets = [1, 0], sizes = [1, 256], strides = [1, 1]} : vector<4x256xf32> to vector<1x256xf32>
    %205 = vector.broadcast %203 : vector<8x1xf32> to vector<8x256xf32>
    %206 = vector.broadcast %204 : vector<1x256xf32> to vector<8x256xf32>
    %207 = arith.mulf %205, %206 : vector<8x256xf32>
    %208 = arith.addf %202, %207 : vector<8x256xf32>
    %c0_35 = arith.constant 0 : index
    %c26 = arith.constant 26 : index
    %209 = vector.load %arg3[%c0_35, %c26] : memref<8x36xf32, #tpu.memory_space<vmem>>, vector<8x1xf32>
    %210 = vector.extract_strided_slice %196 {offsets = [2, 0], sizes = [1, 256], strides = [1, 1]} : vector<4x256xf32> to vector<1x256xf32>
    %211 = vector.broadcast %209 : vector<8x1xf32> to vector<8x256xf32>
    %212 = vector.broadcast %210 : vector<1x256xf32> to vector<8x256xf32>
    %213 = arith.mulf %211, %212 : vector<8x256xf32>
    %214 = arith.addf %208, %213 : vector<8x256xf32>
    %c0_36 = arith.constant 0 : index
    %c27 = arith.constant 27 : index
    %215 = vector.load %arg3[%c0_36, %c27] : memref<8x36xf32, #tpu.memory_space<vmem>>, vector<8x1xf32>
    %216 = vector.extract_strided_slice %196 {offsets = [3, 0], sizes = [1, 256], strides = [1, 1]} : vector<4x256xf32> to vector<1x256xf32>
    %217 = vector.broadcast %215 : vector<8x1xf32> to vector<8x256xf32>
    %218 = vector.broadcast %216 : vector<1x256xf32> to vector<8x256xf32>
    %219 = arith.mulf %217, %218 : vector<8x256xf32>
    %220 = arith.addf %214, %219 : vector<8x256xf32>
    %221 = arith.select %15, %21, %36 : vector<4x256xi1>, vector<4x256xf32>
    %c0_37 = arith.constant 0 : index
    %c28 = arith.constant 28 : index
    %222 = vector.load %arg3[%c0_37, %c28] : memref<8x36xf32, #tpu.memory_space<vmem>>, vector<8x1xf32>
    %223 = vector.extract_strided_slice %221 {offsets = [0, 0], sizes = [1, 256], strides = [1, 1]} : vector<4x256xf32> to vector<1x256xf32>
    %224 = vector.broadcast %222 : vector<8x1xf32> to vector<8x256xf32>
    %225 = vector.broadcast %223 : vector<1x256xf32> to vector<8x256xf32>
    %226 = arith.mulf %224, %225 : vector<8x256xf32>
    %227 = arith.addf %220, %226 : vector<8x256xf32>
    %c0_38 = arith.constant 0 : index
    %c29 = arith.constant 29 : index
    %228 = vector.load %arg3[%c0_38, %c29] : memref<8x36xf32, #tpu.memory_space<vmem>>, vector<8x1xf32>
    %229 = vector.extract_strided_slice %221 {offsets = [1, 0], sizes = [1, 256], strides = [1, 1]} : vector<4x256xf32> to vector<1x256xf32>
    %230 = vector.broadcast %228 : vector<8x1xf32> to vector<8x256xf32>
    %231 = vector.broadcast %229 : vector<1x256xf32> to vector<8x256xf32>
    %232 = arith.mulf %230, %231 : vector<8x256xf32>
    %233 = arith.addf %227, %232 : vector<8x256xf32>
    %c0_39 = arith.constant 0 : index
    %c30 = arith.constant 30 : index
    %234 = vector.load %arg3[%c0_39, %c30] : memref<8x36xf32, #tpu.memory_space<vmem>>, vector<8x1xf32>
    %235 = vector.extract_strided_slice %221 {offsets = [2, 0], sizes = [1, 256], strides = [1, 1]} : vector<4x256xf32> to vector<1x256xf32>
    %236 = vector.broadcast %234 : vector<8x1xf32> to vector<8x256xf32>
    %237 = vector.broadcast %235 : vector<1x256xf32> to vector<8x256xf32>
    %238 = arith.mulf %236, %237 : vector<8x256xf32>
    %239 = arith.addf %233, %238 : vector<8x256xf32>
    %c0_40 = arith.constant 0 : index
    %c31 = arith.constant 31 : index
    %240 = vector.load %arg3[%c0_40, %c31] : memref<8x36xf32, #tpu.memory_space<vmem>>, vector<8x1xf32>
    %241 = vector.extract_strided_slice %221 {offsets = [3, 0], sizes = [1, 256], strides = [1, 1]} : vector<4x256xf32> to vector<1x256xf32>
    %242 = vector.broadcast %240 : vector<8x1xf32> to vector<8x256xf32>
    %243 = vector.broadcast %241 : vector<1x256xf32> to vector<8x256xf32>
    %244 = arith.mulf %242, %243 : vector<8x256xf32>
    %245 = arith.addf %239, %244 : vector<8x256xf32>
    %246 = arith.select %11, %33, %39 : vector<4x256xi1>, vector<4x256xf32>
    %247 = arith.select %11, %18, %24 : vector<4x256xi1>, vector<4x256xf32>
    %248 = arith.select %15, %247, %246 : vector<4x256xi1>, vector<4x256xf32>
    %c0_41 = arith.constant 0 : index
    %c32 = arith.constant 32 : index
    %249 = vector.load %arg3[%c0_41, %c32] : memref<8x36xf32, #tpu.memory_space<vmem>>, vector<8x1xf32>
    %250 = vector.extract_strided_slice %248 {offsets = [0, 0], sizes = [1, 256], strides = [1, 1]} : vector<4x256xf32> to vector<1x256xf32>
    %251 = vector.broadcast %249 : vector<8x1xf32> to vector<8x256xf32>
    %252 = vector.broadcast %250 : vector<1x256xf32> to vector<8x256xf32>
    %253 = arith.mulf %251, %252 : vector<8x256xf32>
    %254 = arith.addf %245, %253 : vector<8x256xf32>
    %c0_42 = arith.constant 0 : index
    %c33 = arith.constant 33 : index
    %255 = vector.load %arg3[%c0_42, %c33] : memref<8x36xf32, #tpu.memory_space<vmem>>, vector<8x1xf32>
    %256 = vector.extract_strided_slice %248 {offsets = [1, 0], sizes = [1, 256], strides = [1, 1]} : vector<4x256xf32> to vector<1x256xf32>
    %257 = vector.broadcast %255 : vector<8x1xf32> to vector<8x256xf32>
    %258 = vector.broadcast %256 : vector<1x256xf32> to vector<8x256xf32>
    %259 = arith.mulf %257, %258 : vector<8x256xf32>
    %260 = arith.addf %254, %259 : vector<8x256xf32>
    %c0_43 = arith.constant 0 : index
    %c34 = arith.constant 34 : index
    %261 = vector.load %arg3[%c0_43, %c34] : memref<8x36xf32, #tpu.memory_space<vmem>>, vector<8x1xf32>
    %262 = vector.extract_strided_slice %248 {offsets = [2, 0], sizes = [1, 256], strides = [1, 1]} : vector<4x256xf32> to vector<1x256xf32>
    %263 = vector.broadcast %261 : vector<8x1xf32> to vector<8x256xf32>
    %264 = vector.broadcast %262 : vector<1x256xf32> to vector<8x256xf32>
    %265 = arith.mulf %263, %264 : vector<8x256xf32>
    %266 = arith.addf %260, %265 : vector<8x256xf32>
    %c0_44 = arith.constant 0 : index
    %c35 = arith.constant 35 : index
    %267 = vector.load %arg3[%c0_44, %c35] : memref<8x36xf32, #tpu.memory_space<vmem>>, vector<8x1xf32>
    %268 = vector.extract_strided_slice %248 {offsets = [3, 0], sizes = [1, 256], strides = [1, 1]} : vector<4x256xf32> to vector<1x256xf32>
    %269 = vector.broadcast %267 : vector<8x1xf32> to vector<8x256xf32>
    %270 = vector.broadcast %268 : vector<1x256xf32> to vector<8x256xf32>
    %271 = arith.mulf %269, %270 : vector<8x256xf32>
    %272 = arith.addf %266, %271 : vector<8x256xf32>
    %c0_45 = arith.constant 0 : index
    %c0_46 = arith.constant 0 : index
    %273 = vector.load %arg4[%c0_45, %c0_46] : memref<8x1xf32, #tpu.memory_space<vmem>>, vector<8x1xf32>
    %274 = vector.broadcast %273 : vector<8x1xf32> to vector<8x256xf32>
    %275 = arith.addf %272, %274 : vector<8x256xf32>
    %cst_47 = arith.constant 0.000000e+00 : f32
    %276 = vector.broadcast %cst_47 : f32 to vector<8x256xf32>
    %277 = arith.cmpf ogt, %275, %276 : vector<8x256xf32>
    %cst_48 = arith.constant 2.000000e-01 : f32
    %278 = vector.broadcast %cst_48 : f32 to vector<8x256xf32>
    %279 = arith.mulf %278, %275 : vector<8x256xf32>
    %280 = arith.select %277, %275, %279 : vector<8x256xi1>, vector<8x256xf32>
    %c0_49 = arith.constant 0 : index
    %c0_50 = arith.constant 0 : index
    %c0_51 = arith.constant 0 : index
    %281 = vector.load %arg5[%c0_49, %c0_50, %c0_51] : memref<1x8x256xf32, #tpu.memory_space<vmem>>, vector<1x8x256xf32>
    %282 = vector.shape_cast %281 : vector<1x8x256xf32> to vector<8x256xf32>
    %283 = vector.shape_cast %280 : vector<8x256xf32> to vector<1x8x256xf32>
    tpu.vector_store %arg5[%c0_49, %c0_50, %c0_51], %283 {strides = array<i32>} : memref<1x8x256xf32, #tpu.memory_space<vmem>>, vector<1x8x256xf32>,
    %cst_52 = arith.constant dense<0.000000e+00> : vector<8xf32>
    %284 = vector.multi_reduction <add>, %280, %cst_52 [1] : vector<8x256xf32> to vector<8xf32>
    %285 = vector.shape_cast %284 : vector<8xf32> to vector<8x1xf32>
    %c0_53 = arith.constant 0 : index
    %c0_54 = arith.constant 0 : index
    %c0_55 = arith.constant 0 : index
    %286 = vector.load %arg6[%c0_53, %c0_54, %c0_55] : memref<1x8x2xf32, #tpu.memory_space<vmem>>, vector<1x8x1xf32>
    %287 = vector.shape_cast %286 : vector<1x8x1xf32> to vector<8x1xf32>
    %288 = vector.shape_cast %285 : vector<8x1xf32> to vector<1x8x1xf32>
    tpu.vector_store %arg6[%c0_53, %c0_54, %c0_55], %288 {strides = array<i32>} : memref<1x8x2xf32, #tpu.memory_space<vmem>>, vector<1x8x1xf32>,
    %289 = arith.mulf %280, %280 : vector<8x256xf32>
    %cst_56 = arith.constant dense<0.000000e+00> : vector<8xf32>
    %290 = vector.multi_reduction <add>, %289, %cst_56 [1] : vector<8x256xf32> to vector<8xf32>
    %291 = vector.shape_cast %290 : vector<8xf32> to vector<8x1xf32>
    %c0_57 = arith.constant 0 : index
    %c0_58 = arith.constant 0 : index
    %c1_59 = arith.constant 1 : index
    %292 = vector.load %arg6[%c0_57, %c0_58, %c1_59] : memref<1x8x2xf32, #tpu.memory_space<vmem>>, vector<1x8x1xf32>
    %293 = vector.shape_cast %292 : vector<1x8x1xf32> to vector<8x1xf32>
    %294 = vector.shape_cast %291 : vector<8x1xf32> to vector<1x8x1xf32>
    tpu.vector_store %arg6[%c0_57, %c0_58, %c1_59], %294 {strides = array<i32>} : memref<1x8x2xf32, #tpu.memory_space<vmem>>, vector<1x8x1xf32>,
    return
  }
  func.func @transform_0(%arg0: i32) -> (i32, i32) {
    %c0_i32 = arith.constant 0 : i32
    %c0_i32_0 = arith.constant 0 : i32
    %c0_i32_1 = arith.constant 0 : i32
    return %c0_i32, %c0_i32_0 : i32, i32
  }
  func.func @transform_1(%arg0: i32) -> (i32, i32, i32) {
    %c0_i32 = arith.constant 0 : i32
    %c0_i32_0 = arith.constant 0 : i32
    %c0_i32_1 = arith.constant 0 : i32
    return %arg0, %c0_i32, %c0_i32_0 : i32, i32, i32
  }
  func.func @transform_2(%arg0: i32) -> (i32, i32) {
    %c0_i32 = arith.constant 0 : i32
    %c0_i32_0 = arith.constant 0 : i32
    %c0_i32_1 = arith.constant 0 : i32
    return %c0_i32, %c0_i32_0 : i32, i32
  }
  func.func @transform_3(%arg0: i32) -> (i32, i32) {
    %c0_i32 = arith.constant 0 : i32
    %c0_i32_0 = arith.constant 0 : i32
    %c0_i32_1 = arith.constant 0 : i32
    return %c0_i32, %c0_i32_0 : i32, i32
  }
  func.func @transform_4(%arg0: i32) -> (i32, i32, i32) {
    %c0_i32 = arith.constant 0 : i32
    %c0_i32_0 = arith.constant 0 : i32
    %c0_i32_1 = arith.constant 0 : i32
    return %arg0, %c0_i32, %c0_i32_0 : i32, i32, i32
  }
  func.func @transform_5(%arg0: i32) -> (i32, i32, i32) {
    %c0_i32 = arith.constant 0 : i32
    %c0_i32_0 = arith.constant 0 : i32
    %c0_i32_1 = arith.constant 0 : i32
    return %arg0, %c0_i32, %c0_i32_0 : i32, i32, i32
  }
}

</mosaic_0001>

<bundles_post_ra>
// kernel: single_convblock_forward.3
= control target key start
LH: loop header
LB: loop body
LE: loop exit
PB: predicated region body
PF: predicated region fallthrough
CT: control target
= control target key end

     0   :  { %s298_s12 = smov 0   ;;  %s321_s0 = inlined_call_operand.vmem [shape: f32[2,8,256], index: 0, kind: input, shape index: {}]   ;;  %s322_s1 = inlined_call_operand.vmem [shape: f32[8,1], index: 1, kind: input, shape index: {}]   ;;  %s323_s2 = inlined_call_operand.vmem [shape: f32[8,1], index: 2, kind: input, shape index: {}]   ;;  %s324_s3 = inlined_call_operand.vmem [shape: f32[2,8,256], index: 3, kind: output, shape index: {}]  }
   0x1 LB: > { %s246_s13 = sadd.s32 4294967295, %s275_s12   ;;  %p250_p0 = scmp.ge.s32.totalorder %s275_s12, 1  ;;  %s275_s12 = sphi %s298_s12, %s13_s12  }
   0x2   : > { %p137_p1 = scmp.lt.s32.totalorder %s275_s12, 3 }
   0x4   : > { %p138_p2 = pnand %p250_p0, %p137_p1 }
   0x5   : > { %p161_p3 = scmp.lt.s32.totalorder (!%p138_p2), %s246_s13, 1 }
   0x6   : > { %141 = sbr.rel (%p138_p2) target bundleno = 140 (0x8c), region = 32 }
   0xb   : > { %v173_v0 = vld [vmem:[%s322_s1] sm:$0xff]  ;;  %v277_v1 = vmov 0   ;;  %s326_s13 = smov (!%p161_p3, %s246_s13), 1 }
   0xc   : > { %268 = vset.pattern.permute.xlu0 %v277_v1  ;;  %v181_v2 = vld [vmem:[%s323_s2] sm:$0xff]  ;;  %s257_s18 = sshll.u32 %s326_s13, 4 }
   0xd   : > { %176 = vperm.xlu0 %268, %v173_v0   ;;  %s165_s21 = scalar_lea.vmem %s321_s0, %s257_s18  ;;  %s170_s24 = scalar_lea.vmem %s324_s3, %s257_s18 }
   0xe   : > { %v171_v4 = vld [vmem:[%s165_s21] sm:$0xff]  ;;  %v172_v5 = vld [vmem:[%s165_s21 + $0x8] sm:$0xff] }
  0x15   : > { %184 = vperm.xlu0 %268, %v181_v2  }
  0x7f   : > { %v177_v3 = vpop.permute.xlu0 %176 }
  0x80   : > { %v179_v6 = vmul.f32 %v177_v3, %v171_v4  ;;  %v180_v7 = vmul.f32 %v177_v3, %v172_v5 }
  0x87   : > { %v185_v8 = vpop.permute.xlu0 %184 }
  0x88   : > { %v187_v9 = vadd.f32 %v185_v8, %v179_v6  ;;  %v188_v10 = vadd.f32 %v185_v8, %v180_v7 }
  0x8a   : > { %189 = vst [vmem:[%s170_s24] sm:$0xff] %v187_v9 }
  0x8b   : > { %190 = vst [vmem:[%s170_s24 + $0x8] sm:$0xff] %v188_v10 }
  0x8c PF: > { %s13_s12 = sadd.s32 1, %s275_s12  }
  0x8d   : > { %p10_p4 = scmp.ge.s32.totalorder %s13_s12, 4  }
  0x8f   :  { %12 = sbr.rel (!%p10_p4) target bundleno = 1 (0x1), region = 62 }

// kernel: single_convblock_forward.2
= control target key start
LH: loop header
LB: loop body
LE: loop exit
PB: predicated region body
PF: predicated region fallthrough
CT: control target
= control target key end

     0   :  { %s1091_s18 = smov 0   ;;  %s1475_s0 = inlined_call_operand.vmem [shape: s32[2,256], index: 0, kind: input, shape index: {}]   ;;  %s1476_s1 = inlined_call_operand.vmem [shape: f32[2,4,256], index: 1, kind: input, shape index: {}]   ;;  %s1477_s2 = inlined_call_operand.vmem [shape: f32[8,36], index: 2, kind: input, shape index: {}]   ;;  %s1478_s3 = inlined_call_operand.vmem [shape: f32[8,1], index: 3, kind: input, shape index: {}]   ;;  %s1479_s4 = inlined_call_operand.vmem [shape: f32[2,8,256], index: 4, kind: output, shape index: {0}]   ;;  %s1480_s5 = inlined_call_operand.vmem [shape: f32[2,8,2], index: 5, kind: output, shape index: {1}]  }
   0x1 LB: > { %s904_s19 = sadd.s32 4294967295, %s1015_s18   ;;  %p908_p0 = scmp.ge.s32.totalorder %s1015_s18, 1  ;;  %s1015_s18 = sphi %s1091_s18, %s16_s18  }
   0x2   : > { %p190_p1 = scmp.lt.s32.totalorder %s1015_s18, 3 }
   0x4   : > { %p191_p2 = pnand %p908_p0, %p190_p1 }
   0x6   : > { %194 = sbr.rel (%p191_p2) target bundleno = 467 (0x1d3), region = 36 }
   0xb   : > { %v1102_v0 = vld [vmem:[%s1477_s2] sm:$0xff]  ;;  %p222_p3 = scmp.lt.s32.totalorder %s904_s19, 1  ;;  %v1017_v1 = vmov 1   ;;  %v1018_v2 = vmov 2   ;;  %v1019_v4 = vmov 3   ;;  %v1020_v5 = vmov 4  }
   0xc   : > { %972 = vset.pattern.permute.xlu1 %v1017_v1  ;;  %973 = vset.pattern.permute.xlu2 %v1018_v2  ;;  %s1021_s26 = smov 17   ;;  %v1022_v7 = vmov 0   ;;  %v1023_v8 = vmov 6   ;;  %v1024_v11 = vmov 7   ;;  %s1025_s27 = smov 16   ;;  %v1026_v15 = vmov 5  }
   0xd   : > { %408 = vperm.xlu1 %972, %v1102_v0   ;;  %s1505_s19 = smov (!%p222_p3, %s904_s19), 1  ;;  %418 = vperm.xlu2 %973, %v1102_v0   ;;  %v1027_v17 = vmov 8   ;;  %s1028_s28 = smov 15   ;;  %v1029_v21 = vmov 9   ;;  %v1032_v26 = vmov 11   ;;  %v1033_v28 = vmov 12  }
   0xe   : > { %s917_s22 = sshll.u32 %s1505_s19, 3  ;;  %971 = vset.pattern.permute.xlu0 %v1022_v7  ;;  %s1030_s29 = smov 1   ;;  %v1035_v31 = vmov 10   ;;  %v1038_v42 = vmov 13   ;;  %vm282_vm0 = vcmask 130048   ;;  %v1039_v46 = vmov 14  }
   0xf   : > { %s226_s25 = scalar_lea.vmem %s1476_s1, %s917_s22  ;;  %s1031_s30 = smov 127   ;;  %vm265_vm1 = vcmask 138240   ;;  %v1040_v53 = vmov 16   ;;  %v1041_v54 = vmov 15   ;;  %v1042_v57 = vmov 17  }
  0x10   : > { %v1114_v3 = vld [vmem:[%s226_s25] sm:$0xff]  ;;  %s1034_s6 = smov 113   ;;  %s1036_s7 = smov 112   ;;  %v1043_v58 = vmov 18   ;;  %v1044_v59 = vmov 20   ;;  %v1045_v62 = vmov 19  }
  0x11   : > { %253 = vst [vmem:[#allocation1] ss:$2 sm:$0xff] %v1114_v3  ;;  %s1037_s8 = smov 111   ;;  %v1046_v63 = vmov 21   ;;  %v1047_v1 = vmov 25   ;;  %vm316_vm2 = vcmask 7168   ;;  %s235_s24 = scalar_lea.vmem %s1480_s5, %s917_s22 }
  0x12   : > { %vm299_vm3 = vcmask 121856   ;;  %vm345_vm4 = vcmask 924672   ;;  %vm362_vm5 = vcmask 916480   ;;  %vm379_vm6 = vcmask 908288   ;;  %s918_s15 = sshll.u32 %s1505_s19, 4 }
  0x13   : > { %vm328_vm13 = vcmask 1039360   ;;  %s231_s20 = scalar_lea.vmem %s1479_s4, %s918_s15 }
  0x15   : > { %974 = vset.pattern.permute.xlu1 %v1019_v4  ;;  %975 = vset.pattern.permute.xlu2 %v1020_v5  ;;  %v1048_v5 = vmov 22  }
  0x16   : > { %428 = vperm.xlu1 %974, %v1102_v0   ;;  %440 = vperm.xlu2 %975, %v1102_v0  }
  0x18   : > { %v254_v6 = vld.sshfl [vmem:[#allocation1 + $0x8] sm:$0xff pattern:$0x75316420] }
  0x19   : > { %258 = vst [vmem:[#allocation1] ss:$2 sm:$0xff] %v1114_v3  ;;  %255 = vrot.lane.b32.xlu0 %v254_v6, %s1021_s26  ;;  %v1049_v6 = vmov 23  }
  0x1e   : > { %977 = vset.pattern.permute.xlu1 %v1023_v8  ;;  %978 = vset.pattern.permute.xlu2 %v1024_v11  ;;  %v1050_v8 = vmov 30  }
  0x20   : > { %v260_v9 = vld.sshfl [vmem:[#allocation1 + $0x8] sm:$0xff pattern:$0x75316420]  ;;  %v259_v10 = vld.sshfl [vmem:[#allocation1] sm:$0xff pattern:$0x75316420] }
  0x21   : > { %263 = vrot.lane.b32.xlu1 %v260_v9, %s1021_s26  ;;  %270 = vst [vmem:[#allocation1] ss:$2 sm:$0xff] %v1114_v3  ;;  %261 = vrot.lane.b32.xlu0 %v259_v10, %s1021_s26 }
  0x28   : > { %v271_v12 = vld.sshfl [vmem:[#allocation1 + $0x8] sm:$0xff pattern:$0x75316420] }
  0x29   : > { %272 = vrot.lane.b32.xlu1 %v271_v12, %s1025_s27  ;;  %275 = vst [vmem:[#allocation1] ss:$2 sm:$0xff] %v1114_v3  ;;  %398 = vperm.xlu0 %971, %v1102_v0   ;;  %v1051_v12 = vmov 24  }
  0x30   : > { %v276_v13 = vld.sshfl [vmem:[#allocation1] sm:$0xff pattern:$0x75316420]  ;;  %v277_v14 = vld.sshfl [vmem:[#allocation1 + $0x8] sm:$0xff pattern:$0x75316420] }
  0x31   : > { %460 = vperm.xlu1 %977, %v1102_v0   ;;  %278 = vrot.lane.b32.xlu2 %v276_v13, %s1025_s27  ;;  %287 = vst [vmem:[#allocation1] ss:$2 sm:$0xff] %v1114_v3  ;;  %v1052_v13 = vmov 26  }
  0x32   : > { %976 = vset.pattern.permute.xlu0 %v1026_v15 }
  0x38   : > { %v288_v16 = vld.sshfl [vmem:[#allocation1 + $0x8] sm:$0xff pattern:$0x75316420] }
  0x39   : > { %979 = vset.pattern.permute.xlu1 %v1027_v17  ;;  %280 = vrot.lane.b32.xlu2 %v277_v14, %s1025_s27  ;;  %292 = vst [vmem:[#allocation1] ss:$2 sm:$0xff] %v1114_v3  ;;  %v1053_v14 = vmov 35  }
  0x3a   : > { %486 = vperm.xlu1 %979, %v1102_v0   ;;  %289 = vrot.lane.b32.xlu0 %v288_v16, %s1028_s28 }
  0x40   : > { %v293_v18 = vld.sshfl [vmem:[#allocation1] sm:$0xff pattern:$0x75316420]  ;;  %v294_v19 = vld.sshfl [vmem:[#allocation1 + $0x8] sm:$0xff pattern:$0x75316420] }
  0x41   : > { %470 = vperm.xlu2 %978, %v1102_v0   ;;  %304 = vst [vmem:[#allocation1] ss:$2 sm:$0xff] %v1114_v3 }
  0x42   : > { %295 = vrot.lane.b32.xlu1 %v293_v18, %s1028_s28  ;;  %450 = vperm.xlu0 %976, %v1102_v0  }
  0x43   : > { %982 = vset.pattern.permute.xlu1 %v1032_v26  ;;  %v1058_v26 = vmov 32  }
  0x48   : > { %v305_v20 = vld.sshfl [vmem:[#allocation1 + $0x8] sm:$0xff pattern:$0x75316420] }
  0x49   : > { %980 = vset.pattern.permute.xlu2 %v1029_v21  ;;  %309 = vst [vmem:[#allocation1] ss:$2 sm:$0xff] %v1114_v3 }
  0x4a   : > { %496 = vperm.xlu2 %980, %v1102_v0   ;;  %306 = vrot.lane.b32.xlu0 %v305_v20, %s1030_s29  ;;  %v1055_v20 = vmov 28  }
  0x4b   : > { %981 = vset.pattern.permute.xlu0 %v1035_v31  ;;  %v791_v31 = vld [vmem:[%s1478_s3] sm:$0xff] }
  0x50   : > { %v310_v22 = vld.sshfl [vmem:[#allocation1] sm:$0xff pattern:$0x75316420]  ;;  %v311_v23 = vld.sshfl [vmem:[#allocation1 + $0x8] sm:$0xff pattern:$0x75316420] }
  0x51   : > { %312 = vrot.lane.b32.xlu1 %v310_v22, %s1030_s29  ;;  %321 = vst [vmem:[#allocation1] ss:$2 sm:$0xff] %v1114_v3 }
  0x52   : > { %297 = vrot.lane.b32.xlu2 %v294_v19, %s1028_s28  ;;  %v1054_v19 = vmov 27  }
  0x53   : > { %983 = vset.pattern.permute.xlu2 %v1033_v28  ;;  %v1059_v28 = vmov 33  }
  0x58   : > { %v323_v24 = vld.sshfl [vmem:[#allocation1 + $0x8] sm:$0xff pattern:$0x75316420]  ;;  %v322_v25 = vld.sshfl [vmem:[#allocation1] sm:$0xff pattern:$0x75316420] }
  0x59   : > { %326 = vrot.lane.b32.xlu1 %v323_v24, %s1031_s30  ;;  %324 = vrot.lane.b32.xlu0 %v322_v25, %s1031_s30  ;;  %332 = vst [vmem:[#allocation1] ss:$2 sm:$0xff] %v1114_v3  ;;  %v1057_v24 = vmov 31  }
  0x5a   : > { %314 = vrot.lane.b32.xlu2 %v311_v23, %s1030_s29  ;;  %v1056_v23 = vmov 29  }
  0x60   : > { %v333_v27 = vld.sshfl [vmem:[#allocation1] sm:$0xff pattern:$0x75316420] }
  0x61   : > { %338 = vst [vmem:[#allocation1] ss:$2 sm:$0xff] %v1114_v3 }
  0x62   : > { %334 = vrot.lane.b32.xlu2 %v333_v27, %s1031_s30 }
  0x67   : > { %v1138_v33 = vpop.permute.xlu2 %418 }
  0x68   : > { %v340_v29 = vld.sshfl [vmem:[#allocation1 + $0x8] sm:$0xff pattern:$0x75316420]  ;;  %v339_v30 = vld.sshfl [vmem:[#allocation1] sm:$0xff pattern:$0x75316420] }
  0x69   : > { %343 = vrot.lane.b32.xlu1 %v340_v29, %s1034_s6  ;;  %341 = vrot.lane.b32.xlu0 %v339_v30, %s1034_s6  ;;  %349 = vst [vmem:[#allocation1] ss:$2 sm:$0xff] %v1114_v3 }
  0x70   : > { %v350_v32 = vld.sshfl [vmem:[#allocation1] sm:$0xff pattern:$0x75316420]  ;;  %v1145_v38 = vpop.permute.xlu2 %440 }
  0x71   : > { %351 = vrot.lane.b32.xlu2 %v350_v32, %s1034_s6  ;;  %355 = vst [vmem:[#allocation1] ss:$2 sm:$0xff] %v1114_v3  ;;  %v1060_v32 = vmov 34  }
  0x78   : > { %v357_v34 = vld.sshfl [vmem:[#allocation1 + $0x8] sm:$0xff pattern:$0x75316420]  ;;  %v356_v35 = vld.sshfl [vmem:[#allocation1] sm:$0xff pattern:$0x75316420] }
  0x79   : > { %360 = vrot.lane.b32.xlu1 %v357_v34, %s1036_s7  ;;  %358 = vrot.lane.b32.xlu0 %v356_v35, %s1036_s7  ;;  %366 = vst [vmem:[#allocation1] ss:$2 sm:$0xff] %v1114_v3 }
  0x7f   : > { %v1141_v36 = vpop.permute.xlu1 %408 }
  0x80   : > { %v367_v37 = vld.sshfl [vmem:[#allocation1] sm:$0xff pattern:$0x75316420] }
  0x81   : > { %516 = vperm.xlu1 %982, %v1102_v0   ;;  %368 = vrot.lane.b32.xlu2 %v367_v37, %s1036_s7  ;;  %372 = vst [vmem:[#allocation1] ss:$2 sm:$0xff] %v1114_v3 }
  0x88   : > { %v374_v39 = vld.sshfl [vmem:[#allocation1 + $0x8] sm:$0xff pattern:$0x75316420]  ;;  %v373_v40 = vld.sshfl [vmem:[#allocation1] sm:$0xff pattern:$0x75316420]  ;;  %v1149_v41 = vpop.permute.xlu1 %428 }
  0x89   : > { %528 = vperm.xlu2 %983, %v1102_v0   ;;  %377 = vrot.lane.b32.xlu1 %v374_v39, %s1037_s8  ;;  %383 = vst [vmem:[#allocation1] ss:$2 sm:$0xff] %v1114_v3 }
  0x8a   : > { %375 = vrot.lane.b32.xlu0 %v373_v40, %s1037_s8  ;;  %984 = vset.pattern.permute.xlu1 %v1038_v42  ;;  %v237_v42 = vld [vmem:[%s1475_s0] ss:$2 sm:$0x3] }
  0x8b   : > { %v279_v43 = vpop.permute.xlu2 %278  ;;  %v256_v44 = vpop.permute.xlu0 %255 }
  0x90   : > { %v384_v45 = vld.sshfl [vmem:[#allocation1] sm:$0xff pattern:$0x75316420] }
  0x91   : > { %538 = vperm.xlu1 %984, %v1102_v0   ;;  %385 = vrot.lane.b32.xlu2 %v384_v45, %s1037_s8 }
  0x92   : > { %506 = vperm.xlu0 %981, %v1102_v0   ;;  %985 = vset.pattern.permute.xlu2 %v1039_v46  ;;  %v238_v46 = vperm.slane %v237_v42, 0 }
  0x93   : > { %v264_v47 = vpop.permute.xlu1 %263  ;;  %v281_v48 = vpop.permute.xlu2 %280 }
  0x94   : > { %v1154_v49 = vsel %vm282_vm0, %v279_v43, %v281_v48  ;;  %v262_v50 = vpop.permute.xlu0 %261  ;;  %vm1241_vm8 = vcmp.eq.s32.totalorder %v238_v46, 0  ;;  %vm1312_vm12 = vcmp.eq.s32.totalorder %v238_v46, 15 }
  0x95   : > { %v1156_v51 = vsel %vm265_vm1, %v262_v50, %v264_v47  ;;  %v1158_v52 = vsel %vm265_vm1, %v256_v44, %v262_v50 }
  0x99   : > { %987 = vset.pattern.permute.xlu1 %v1040_v53  ;;  %548 = vperm.xlu2 %985, %v1102_v0  }
  0x9a   : > { %986 = vset.pattern.permute.xlu0 %v1041_v54  ;;  %568 = vperm.xlu1 %987, %v1102_v0   ;;  %v572_v54 = vperm.slane %v1114_v3, 4 }
  0x9b   : > { %558 = vperm.xlu0 %986, %v1102_v0   ;;  %v273_v55 = vpop.permute.xlu1 %272  ;;  %v1169_v60 = vpop.permute.xlu2 %470 }
  0x9c   : > { %v1164_v56 = vsel %vm282_vm0, %v273_v55, %v279_v43  ;;  %v1185_v10 = vpop.permute.xlu0 %398 }
  0x9d   : > { %1484 = vst [vmem:[#allocation2_spill] sm:$0xff] %v1164_v56 }
  0xa1   : > { %988 = vset.pattern.permute.xlu2 %v1042_v57 }
  0xa2   : > { %989 = vset.pattern.permute.xlu1 %v1043_v58  ;;  %582 = vperm.xlu2 %988, %v1102_v0  }
  0xa3   : > { %991 = vset.pattern.permute.xlu0 %v1044_v59  ;;  %596 = vperm.xlu1 %989, %v1102_v0   ;;  %v1171_v61 = vpop.permute.xlu1 %460 }
  0xa4   : > { %626 = vperm.xlu0 %991, %v1102_v0   ;;  %v1176_v2 = vpop.permute.xlu2 %496 }
  0xaa   : > { %990 = vset.pattern.permute.xlu2 %v1045_v62 }
  0xab   : > { %992 = vset.pattern.permute.xlu1 %v1046_v63  ;;  %610 = vperm.xlu2 %990, %v1102_v0  }
  0xac   : > { %996 = vset.pattern.permute.xlu0 %v1047_v1  ;;  %636 = vperm.xlu1 %992, %v1102_v0   ;;  %v1178_v4 = vpop.permute.xlu1 %486  ;;  %v1183_v9 = vpop.permute.xlu2 %297 }
  0xad   : > { %678 = vperm.xlu0 %996, %v1102_v0   ;;  %v290_v17 = vpop.permute.xlu0 %289 }
  0xb3   : > { %993 = vset.pattern.permute.xlu2 %v1048_v5 }
  0xb4   : > { %994 = vset.pattern.permute.xlu1 %v1049_v6  ;;  %646 = vperm.xlu2 %993, %v1102_v0   ;;  %v1187_v11 = vpop.permute.xlu1 %295  ;;  %v315_v15 = vpop.permute.xlu2 %314 }
  0xb5   : > { %1001 = vset.pattern.permute.xlu0 %v1050_v8  ;;  %656 = vperm.xlu1 %994, %v1102_v0   ;;  %v1203_v22 = vpop.permute.xlu0 %450  ;;  %v300_v50 = vsel %vm299_vm3, %v1187_v11, %v1183_v9  ;;  %v303_v5 = vsel %vm299_vm3, %v290_v17, %v1187_v11  ;;  %vm816_vm3 = vcmask 15368  }
  0xb6   : > { %730 = vperm.xlu0 %1001, %v1102_v0  }
  0xbc   : > { %995 = vset.pattern.permute.xlu2 %v1051_v12  ;;  %v1201_v21 = vpop.permute.xlu2 %334 }
  0xbd   : > { %997 = vset.pattern.permute.xlu1 %v1052_v13  ;;  %668 = vperm.xlu2 %995, %v1102_v0   ;;  %v1207_v27 = vpop.permute.xlu0 %306 }
  0xbe   : > { %1006 = vset.pattern.permute.xlu0 %v1053_v14  ;;  %688 = vperm.xlu1 %997, %v1102_v0  }
  0xbf   : > { %782 = vperm.xlu0 %1006, %v1102_v0  }
  0xc3   : > { %v1192_v16 = vpop.permute.xlu1 %312 }
  0xc4   : > { %v1196_v18 = vsel %vm316_vm2, %v1192_v16, %v315_v15 }
  0xc5   : > { %998 = vset.pattern.permute.xlu2 %v1054_v19 }
  0xc6   : > { %999 = vset.pattern.permute.xlu1 %v1055_v20  ;;  %698 = vperm.xlu2 %998, %v1102_v0  }
  0xc7   : > { %710 = vperm.xlu1 %999, %v1102_v0   ;;  %1008 = vset.pattern.permute.xlu0 %v1022_v7 }
  0xcb   : > { %v352_v25 = vpop.permute.xlu2 %351  ;;  %v1210_v29 = vpop.permute.xlu1 %326 }
  0xcc   : > { %v1218_v35 = vpop.permute.xlu0 %324 }
  0xce   : > { %1000 = vset.pattern.permute.xlu2 %v1056_v23 }
  0xcf   : > { %1002 = vset.pattern.permute.xlu1 %v1057_v24  ;;  %720 = vperm.xlu2 %1000, %v1102_v0  }
  0xd0   : > { %740 = vperm.xlu1 %1002, %v1102_v0  }
  0xd7   : > { %1003 = vset.pattern.permute.xlu2 %v1058_v26  ;;  %v1297_v26 = vsel %vm1241_vm8, %v303_v5, %v1158_v52 }
  0xd8   : > { %1004 = vset.pattern.permute.xlu1 %v1059_v28  ;;  %752 = vperm.xlu2 %1003, %v1102_v0  }
  0xd9   : > { %762 = vperm.xlu1 %1004, %v1102_v0  }
  0xdb   : > { %v369_v30 = vpop.permute.xlu2 %368  ;;  %v344_v34 = vpop.permute.xlu1 %343 }
  0xdc   : > { %v342_v39 = vpop.permute.xlu0 %341  ;;  %v354_v57 = vsel %vm345_vm4, %v344_v34, %v352_v25 }
  0xdd   : > { %v346_v12 = vsel %vm345_vm4, %v342_v39, %v344_v34 }
  0xe0   : > { %1005 = vset.pattern.permute.xlu2 %v1060_v32 }
  0xe1   : > { %1007 = vset.pattern.permute.xlu1 %v1022_v7  ;;  %772 = vperm.xlu2 %1005, %v1102_v0   ;;  %v1230_v0 = vld [vmem:[%s1475_s0 + $0x1] ss:$2 sm:$0x3]  ;;  %v239_v7 = vperm.slane %v237_v42, 1 }
  0xe2   : > { %794 = vperm.xlu1 %1007, %v791_v31   ;;  %v1482_v47 = vperm.slane %v1230_v0, 1  ;;  %v1481_v53 = vperm.slane %v1230_v0, 0 }
  0xe3   : > { %v1220_v37 = vpop.permute.xlu2 %528  ;;  %vm1233_vm7 = vcmp.eq.s32.totalorder %v239_v7, 0  ;;  %vm1290_vm11 = vcmp.eq.s32.totalorder %v239_v7, 15 }
  0xe4   : > { %vm1248_vm9 = vcmp.eq.s32.totalorder %v1482_v47, 0  ;;  %v1258_v1 = vsel %vm1233_vm7, %v300_v50, %v1156_v51  ;;  %vm1271_vm10 = vcmp.eq.s32.totalorder %v1481_v53, 0  ;;  %v1328_v46 = vsel %vm1290_vm11, %v1156_v51, %v300_v50 }
  0xeb   : > { %v361_v40 = vpop.permute.xlu1 %360  ;;  %v386_v43 = vpop.permute.xlu2 %385 }
  0xec   : > { %v359_v45 = vpop.permute.xlu0 %358  ;;  %v1253_v59 = vsel %vm362_vm5, %v361_v40, %v369_v30 }
  0xed   : > { %v1276_v14 = vsel %vm362_vm5, %v359_v45, %v361_v40  ;;  %v438_v15 = vsel %vm1248_vm9, %v1253_v59, %v1154_v49 }
  0xee   : > { %v444_v31 = vperm.slane %v438_v15, 0  ;;  %v437_v32 = vsel %vm1271_vm10, %v1276_v14, %v1164_v56  ;;  %v464_v47 = vperm.slane %v438_v15, 2 }
  0xf0   : > { %v446_v56 = vmul.f32 %v444_v31, %v1145_v38 }
  0xf3   : > { %v1225_v44 = vpop.permute.xlu1 %516  ;;  %v1262_v6 = vpop.permute.xlu2 %548 }
  0xfb   : > { %v378_v55 = vpop.permute.xlu1 %377 }
  0xfc   : > { %v388_v62 = vsel %vm379_vm6, %v378_v55, %v386_v43  ;;  %v376_v63 = vpop.permute.xlu0 %375  ;;  %v1323_v53 = vpop.permute.xlu2 %582 }
  0xfd   : > { %v1266_v8 = vsel %vm1233_vm7, %v388_v62, %v354_v57  ;;  %v380_v9 = vsel %vm379_vm6, %v376_v63, %v378_v55  ;;  %v454_v63 = vperm.slane %v438_v15, 1 }
  0xfe   : > { %v394_v11 = vsel %vm1248_vm9, %v1266_v8, %v1258_v1  ;;  %v1288_v24 = vsel %vm1241_vm8, %v380_v9, %v346_v12 }
  0xff   : > { %v402_v17 = vperm.slane %v394_v11, 0  ;;  %v412_v19 = vperm.slane %v394_v11, 1  ;;  %v422_v20 = vperm.slane %v394_v11, 2  ;;  %v432_v23 = vperm.slane %v394_v11, 3 }
 0x100   : > { %v393_v39 = vsel %vm1271_vm10, %v1288_v24, %v1297_v26 }
 0x101   : > { %v404_v28 = vmul.f32 %v402_v17, %v1185_v10  ;;  %v414_v30 = vmul.f32 %v412_v19, %v1141_v36  ;;  %v424_v34 = vmul.f32 %v422_v20, %v1138_v33  ;;  %v401_v42 = vperm.slane %v393_v39, 0 }
 0x102   : > { %v411_v43 = vperm.slane %v393_v39, 1  ;;  %v421_v45 = vperm.slane %v393_v39, 2  ;;  %v434_v11 = vmul.f32 %v432_v23, %v1149_v41  ;;  %v1319_v17 = vsel %vm1290_vm11, %v354_v57, %v388_v62 }
 0x103   : > { %v416_v40 = vadd.f32 %v414_v30, %v404_v28  ;;  %v1310_v7 = vpop.permute.xlu1 %538  ;;  %v403_v20 = vmul.f32 %v401_v42, %v1185_v10  ;;  %v431_v30 = vperm.slane %v393_v39, 3  ;;  %v443_v23 = vperm.slane %v437_v32, 0 }
 0x104   : > { %v413_v28 = vmul.f32 %v411_v43, %v1141_v36  ;;  %v456_v10 = vmul.f32 %v454_v63, %v1203_v22  ;;  %v474_v36 = vperm.slane %v438_v15, 3  ;;  %v453_v39 = vperm.slane %v437_v32, 1 }
 0x105   : > { %v426_v19 = vadd.f32 %v424_v34, %v416_v40  ;;  %v423_v34 = vmul.f32 %v421_v45, %v1138_v33  ;;  %v484_v40 = vsel %vm1248_vm9, %v1319_v17, %v1328_v46  ;;  %v433_v50 = vmul.f32 %v431_v30, %v1149_v41 }
 0x106   : > { %v415_v62 = vadd.f32 %v413_v28, %v403_v20  ;;  %v1340_v42 = vsel %vm1312_vm12, %v346_v12, %v380_v9  ;;  %v1345_v33 = vsel %vm1312_vm12, %v1158_v52, %v303_v5  ;;  %v466_v15 = vmul.f32 %v464_v47, %v1171_v61 }
 0x107   : > { %v436_v57 = vadd.f32 %v434_v11, %v426_v19  ;;  %v463_v43 = vperm.slane %v437_v32, 2  ;;  %v445_v45 = vmul.f32 %v443_v23, %v1145_v38  ;;  %v490_v58 = vperm.slane %v484_v40, 0  ;;  %v1374_v23 = vpop.permute.xlu2 %610 }
 0x108   : > { %v425_v51 = vadd.f32 %v423_v34, %v415_v62  ;;  %v1352_v41 = vsel %vm328_vm13, %v1210_v29, %v1201_v21  ;;  %v473_v9 = vperm.slane %v437_v32, 3  ;;  %v483_v52 = vsel %vm1271_vm10, %v1340_v42, %v1345_v33  ;;  %v507_v62 = vpop.permute.xlu0 %506 }
 0x109   : > { %v448_v31 = vadd.f32 %v446_v56, %v436_v57  ;;  %v476_v56 = vmul.f32 %v474_v36, %v1169_v60  ;;  %v455_v38 = vmul.f32 %v453_v39, %v1203_v22  ;;  %v500_v19 = vperm.slane %v484_v40, 1 }
 0x10a   : > { %v435_v63 = vadd.f32 %v433_v50, %v425_v51  ;;  %v1365_v21 = vsel %vm316_vm2, %v1207_v27, %v1192_v16  ;;  %v1370_v32 = vsel %vm328_vm13, %v1218_v35, %v1210_v29  ;;  %v465_v13 = vmul.f32 %v463_v43, %v1171_v61 }
 0x10b   : > { %v458_v11 = vadd.f32 %v456_v10, %v448_v31  ;;  %v489_v20 = vperm.slane %v483_v52, 0  ;;  %v492_v22 = vmul.f32 %v490_v58, %v1178_v4  ;;  %v526_v16 = vsel %vm1233_vm7, %v1352_v41, %v1196_v18 }
 0x10c   : > { %v1359_v47 = vpop.permute.xlu1 %568  ;;  %v447_v5 = vadd.f32 %v445_v45, %v435_v63  ;;  %v475_v27 = vmul.f32 %v473_v9, %v1169_v60  ;;  %v499_v57 = vperm.slane %v483_v52, 1  ;;  %v510_v29 = vperm.slane %v484_v40, 2 }
 0x10d   : > { %v468_v12 = vadd.f32 %v466_v15, %v458_v11  ;;  %v502_v61 = vmul.f32 %v500_v19, %v1176_v2  ;;  %v520_v10 = vperm.slane %v484_v40, 3  ;;  %v491_v39 = vmul.f32 %v489_v20, %v1178_v4 }
 0x10e   : > { %v457_v28 = vadd.f32 %v455_v38, %v447_v5  ;;  %v512_v50 = vmul.f32 %v510_v29, %v507_v62  ;;  %v525_v48 = vsel %vm1241_vm8, %v1370_v32, %v1365_v21  ;;  %v532_v31 = vperm.slane %v526_v16, 0 }
 0x10f   : > { %v478_v30 = vadd.f32 %v476_v56, %v468_v12  ;;  %v509_v60 = vperm.slane %v483_v52, 2  ;;  %v519_v15 = vperm.slane %v483_v52, 3  ;;  %v501_v45 = vmul.f32 %v499_v57, %v1176_v2 }
 0x110   : > { %v467_v35 = vadd.f32 %v465_v13, %v457_v28  ;;  %v522_v63 = vmul.f32 %v520_v10, %v1225_v44  ;;  %v534_v4 = vmul.f32 %v532_v31, %v1220_v37  ;;  %v542_v11 = vperm.slane %v526_v16, 1  ;;  %v559_v29 = vpop.permute.xlu0 %558 }
 0x111   : > { %v494_v34 = vadd.f32 %v492_v22, %v478_v30  ;;  %v511_v9 = vmul.f32 %v509_v60, %v507_v62  ;;  %v531_v5 = vperm.slane %v525_v48, 0  ;;  %v552_v12 = vperm.slane %v526_v16, 2  ;;  %v1396_v30 = vpop.permute.xlu2 %646 }
 0x112   : > { %v477_v36 = vadd.f32 %v475_v27, %v467_v35  ;;  %v586_v52 = vperm.slane %v1114_v3, 5  ;;  %v541_v19 = vperm.slane %v525_v48, 1  ;;  %v544_v2 = vmul.f32 %v542_v11, %v1310_v7 }
 0x113   : > { %v504_v51 = vadd.f32 %v502_v61, %v494_v34  ;;  %v521_v13 = vmul.f32 %v519_v15, %v1225_v44  ;;  %v533_v22 = vmul.f32 %v531_v5, %v1220_v37  ;;  %v554_v27 = vmul.f32 %v552_v12, %v1262_v6 }
 0x114   : > { %v493_v43 = vadd.f32 %v491_v39, %v477_v36  ;;  %v571_v57 = vperm.slane %v1114_v3, 0  ;;  %v562_v62 = vperm.slane %v526_v16, 3  ;;  %v576_v34 = vperm.slane %v572_v54, 0 }
 0x115   : > { %v514_v58 = vadd.f32 %v512_v50, %v504_v51  ;;  %v1389_v40 = vpop.permute.xlu1 %596  ;;  %v600_v10 = vperm.slane %v1114_v3, 6  ;;  %v551_v36 = vperm.slane %v525_v48, 2  ;;  %v585_v44 = vperm.slane %v1114_v3, 1 }
 0x116   : > { %v503_v56 = vadd.f32 %v501_v45, %v493_v43  ;;  %v590_v39 = vperm.slane %v586_v52, 1  ;;  %v543_v51 = vmul.f32 %v541_v19, %v1310_v7  ;;  %v614_v37 = vperm.slane %v1114_v3, 7 }
 0x117   : > { %v524_v38 = vadd.f32 %v522_v63, %v514_v58  ;;  %v564_v60 = vmul.f32 %v562_v62, %v559_v29  ;;  %v553_v15 = vmul.f32 %v551_v36, %v1262_v6  ;;  %v575_v16 = vperm.slane %v571_v57, 0 }
 0x118   : > { %v513_v20 = vadd.f32 %v511_v9, %v503_v56  ;;  %v561_v43 = vperm.slane %v525_v48, 3  ;;  %v599_v45 = vperm.slane %v1114_v3, 2  ;;  %v578_v63 = vmul.f32 %v576_v34, %v1359_v47 }
 0x119   : > { %v536_v28 = vadd.f32 %v534_v4, %v524_v38  ;;  %v604_v56 = vperm.slane %v600_v10, 2  ;;  %v624_v7 = vsel %vm1290_vm11, %v1196_v18, %v1352_v41  ;;  %v589_v9 = vperm.slane %v585_v44, 1  ;;  %v627_v41 = vpop.permute.xlu0 %626 }
 0x11a   : > { %v523_v35 = vadd.f32 %v521_v13, %v513_v20  ;;  %v592_v38 = vmul.f32 %v590_v39, %v1323_v53  ;;  %v613_v6 = vperm.slane %v1114_v3, 3  ;;  %v618_v54 = vperm.slane %v614_v37, 3 }
 0x11b   : > { %v546_v61 = vadd.f32 %v544_v2, %v536_v28  ;;  %v563_v5 = vmul.f32 %v561_v43, %v559_v29  ;;  %v603_v52 = vperm.slane %v599_v45, 2  ;;  %v577_v19 = vmul.f32 %v575_v16, %v1359_v47  ;;  %v669_v28 = vpop.permute.xlu2 %668 }
 0x11c   : > { %v535_v50 = vadd.f32 %v533_v22, %v523_v35  ;;  %v606_v20 = vmul.f32 %v604_v56, %v1389_v40  ;;  %v623_v18 = vsel %vm1312_vm12, %v1365_v21, %v1370_v32  ;;  %v591_v25 = vmul.f32 %v589_v9, %v1323_v53 }
 0x11d   : > { %v556_v31 = vadd.f32 %v554_v27, %v546_v61  ;;  %v630_v3 = vperm.slane %v624_v7, 0  ;;  %v617_v22 = vperm.slane %v613_v6, 3  ;;  %v620_v27 = vmul.f32 %v618_v54, %v1374_v23 }
 0x11e   : > { %v637_v58 = vpop.permute.xlu1 %636  ;;  %v545_v4 = vadd.f32 %v543_v51, %v535_v50  ;;  %v1497_v47 = vperm.slane %v1230_v0, 1  ;;  %v640_v35 = vperm.slane %v624_v7, 1  ;;  %v605_v55 = vmul.f32 %v603_v52, %v1389_v40 }
 0x11f   : > { %v566_v11 = vadd.f32 %v564_v60, %v556_v31  ;;  %v632_v32 = vmul.f32 %v630_v3, %v627_v41  ;;  %v650_v10 = vperm.slane %v624_v7, 2  ;;  %v629_v36 = vperm.slane %v623_v18, 0 }
 0x120   : > { %v555_v48 = vadd.f32 %v553_v15, %v545_v4  ;;  %vm1424_vm14 = vcmp.eq.s32.totalorder %v1497_v47, 15  ;;  %v619_v44 = vmul.f32 %v617_v22, %v1374_v23  ;;  %v642_v50 = vmul.f32 %v640_v35, %v637_v58 }
 0x121   : > { %v580_v12 = vadd.f32 %v578_v63, %v566_v11  ;;  %v666_v61 = vsel %vm1424_vm14, %v1258_v1, %v1266_v8  ;;  %v1500_v37 = vperm.slane %v1230_v0, 0  ;;  %v639_v40 = vperm.slane %v623_v18, 1 }
 0x122   : > { %v565_v2 = vadd.f32 %v563_v5, %v555_v48  ;;  %v660_v60 = vperm.slane %v624_v7, 3  ;;  %v652_v15 = vmul.f32 %v650_v10, %v1396_v30  ;;  %v631_v43 = vmul.f32 %v629_v36, %v627_v41  ;;  %v679_v7 = vpop.permute.xlu0 %678 }
 0x123   : > { %v594_v13 = vadd.f32 %v592_v38, %v580_v12  ;;  %vm1436_vm15 = vcmp.eq.s32.totalorder %v1500_v37, 15  ;;  %v649_v23 = vperm.slane %v623_v18, 2  ;;  %v672_v45 = vperm.slane %v666_v61, 0  ;;  %v699_v4 = vpop.permute.xlu2 %698 }
 0x124   : > { %v579_v57 = vadd.f32 %v577_v19, %v565_v2  ;;  %v665_v8 = vsel %vm1436_vm15, %v1297_v26, %v1288_v24  ;;  %v641_v0 = vmul.f32 %v639_v40, %v637_v58  ;;  %v659_v38 = vperm.slane %v623_v18, 3  ;;  %v1503_v18 = vld [vmem:[#allocation2_spill] sm:$0xff] }
 0x125   : > { %v608_v62 = vadd.f32 %v606_v20, %v594_v13  ;;  %v651_v9 = vmul.f32 %v649_v23, %v1396_v30  ;;  %v674_v6 = vmul.f32 %v672_v45, %v669_v28  ;;  %v682_v48 = vperm.slane %v666_v61, 1 }
 0x126   : > { %v593_v34 = vadd.f32 %v591_v25, %v579_v57  ;;  %v671_v12 = vperm.slane %v665_v8, 0  ;;  %v692_v19 = vperm.slane %v666_v61, 2  ;;  %v681_v20 = vperm.slane %v665_v8, 1 }
 0x127   : > { %v622_v21 = vadd.f32 %v620_v27, %v608_v62  ;;  %v657_v53 = vpop.permute.xlu1 %656  ;;  %v684_v2 = vmul.f32 %v682_v48, %v679_v7  ;;  %v702_v58 = vperm.slane %v666_v61, 3  ;;  %v708_v30 = vsel %vm1424_vm14, %v1154_v49, %v1253_v59 }
 0x128   : > { %v607_v39 = vadd.f32 %v605_v55, %v593_v34  ;;  %v662_v56 = vmul.f32 %v660_v60, %v657_v53  ;;  %v661_v26 = vmul.f32 %v659_v38, %v657_v53  ;;  %v673_v25 = vmul.f32 %v671_v12, %v669_v28 }
 0x129   : > { %v634_v51 = vadd.f32 %v632_v32, %v622_v21  ;;  %v707_v27 = vsel %vm1436_vm15, %v1503_v18, %v1276_v14  ;;  %v691_v57 = vperm.slane %v665_v8, 2  ;;  %v683_v62 = vmul.f32 %v681_v20, %v679_v7 }
 0x12a   : > { %v621_v16 = vadd.f32 %v619_v44, %v607_v39  ;;  %v704_v47 = vmul.f32 %v702_v58, %v699_v4  ;;  %v701_v55 = vperm.slane %v665_v8, 3  ;;  %v713_v61 = vperm.slane %v707_v27, 0 }
 0x12b   : > { %v644_v1 = vadd.f32 %v642_v50, %v634_v51  ;;  %v721_v28 = vpop.permute.xlu2 %720  ;;  %v714_v10 = vperm.slane %v708_v30, 0  ;;  %v724_v59 = vperm.slane %v708_v30, 1  ;;  %v731_v50 = vpop.permute.xlu0 %730  ;;  %v723_v14 = vperm.slane %v707_v27, 1 }
 0x12c   : > { %v633_v63 = vadd.f32 %v631_v43, %v621_v16  ;;  %v703_v36 = vmul.f32 %v701_v55, %v699_v4  ;;  %v734_v40 = vperm.slane %v708_v30, 2  ;;  %v733_v16 = vperm.slane %v707_v27, 2 }
 0x12d   : > { %v654_v11 = vadd.f32 %v652_v15, %v644_v1  ;;  %v726_v60 = vmul.f32 %v724_v59, %v721_v28  ;;  %v725_v43 = vmul.f32 %v723_v14, %v721_v28  ;;  %v749_v4 = vsel %vm1436_vm15, %v1345_v33, %v1340_v42 }
 0x12e   : > { %v643_v54 = vadd.f32 %v641_v0, %v633_v63  ;;  %v736_v8 = vmul.f32 %v734_v40, %v731_v50  ;;  %v735_v45 = vmul.f32 %v733_v16, %v731_v50  ;;  %v750_v0 = vsel %vm1424_vm14, %v1328_v46, %v1319_v17 }
 0x12f   : > { %v664_v5 = vadd.f32 %v662_v56, %v654_v11  ;;  %v744_v7 = vperm.slane %v708_v30, 3  ;;  %v756_v48 = vperm.slane %v750_v0, 0  ;;  %v775_v33 = vperm.slane %v749_v4, 2 }
 0x130   : > { %v689_v52 = vpop.permute.xlu1 %688  ;;  %v653_v24 = vadd.f32 %v651_v9, %v643_v54  ;;  %v743_v9 = vperm.slane %v707_v27, 3  ;;  %v755_v54 = vperm.slane %v749_v4, 0 }
 0x131   : > { %v676_v13 = vadd.f32 %v674_v6, %v664_v5  ;;  %v694_v22 = vmul.f32 %v692_v19, %v689_v52  ;;  %v693_v32 = vmul.f32 %v691_v57, %v689_v52 }
 0x132   : > { %v663_v3 = vadd.f32 %v661_v26, %v653_v24  ;;  %v765_v24 = vperm.slane %v749_v4, 1  ;;  %v766_v26 = vperm.slane %v750_v0, 1 }
 0x133   : > { %v686_v41 = vadd.f32 %v684_v2, %v676_v13  ;;  %v753_v56 = vpop.permute.xlu2 %752  ;;  %v776_v13 = vperm.slane %v750_v0, 2 }
 0x134   : > { %v675_v35 = vadd.f32 %v673_v25, %v663_v3  ;;  %v757_v52 = vmul.f32 %v755_v54, %v753_v56  ;;  %v758_v19 = vmul.f32 %v756_v48, %v753_v56  ;;  %v785_v25 = vperm.slane %v749_v4, 3  ;;  %v783_v3 = vpop.permute.xlu0 %782 }
 0x135   : > { %v696_v34 = vadd.f32 %v694_v22, %v686_v41  ;;  %v786_v41 = vperm.slane %v750_v0, 3 }
 0x136   : > { %v685_v21 = vadd.f32 %v683_v62, %v675_v35  ;;  %v787_v57 = vmul.f32 %v785_v25, %v783_v3 }
 0x137   : > { %v706_v53 = vadd.f32 %v704_v47, %v696_v34  ;;  %v788_v62 = vmul.f32 %v786_v41, %v783_v3 }
 0x138   : > { %v695_v44 = vadd.f32 %v693_v32, %v685_v21 }
 0x139   : > { %v711_v49 = vpop.permute.xlu1 %710 }
 0x13a   : > { %v715_v39 = vmul.f32 %v713_v61, %v711_v49  ;;  %v716_v51 = vmul.f32 %v714_v10, %v711_v49  ;;  %v705_v37 = vadd.f32 %v703_v36, %v695_v44 }
 0x13b   : > { %v773_v31 = vpop.permute.xlu2 %772 }
 0x13c   : > { %v718_v15 = vadd.f32 %v716_v51, %v706_v53  ;;  %v717_v1 = vadd.f32 %v715_v39, %v705_v37  ;;  %v777_v22 = vmul.f32 %v775_v33, %v773_v31  ;;  %v778_v30 = vmul.f32 %v776_v13, %v773_v31 }
 0x13e   : > { %v728_v23 = vadd.f32 %v726_v60, %v718_v15  ;;  %v727_v63 = vadd.f32 %v725_v43, %v717_v1 }
 0x140   : > { %v738_v11 = vadd.f32 %v736_v8, %v728_v23  ;;  %v737_v38 = vadd.f32 %v735_v45, %v727_v63 }
 0x142   : > { %v741_v6 = vpop.permute.xlu1 %740 }
 0x143   : > { %v745_v5 = vmul.f32 %v743_v9, %v741_v6  ;;  %v746_v12 = vmul.f32 %v744_v7, %v741_v6 }
 0x145   : > { %v747_v2 = vadd.f32 %v745_v5, %v737_v38  ;;  %v748_v29 = vadd.f32 %v746_v12, %v738_v11 }
 0x147   : > { %v759_v17 = vadd.f32 %v757_v52, %v747_v2  ;;  %v760_v46 = vadd.f32 %v758_v19, %v748_v29 }
 0x14b   : > { %v763_v42 = vpop.permute.xlu1 %762 }
 0x14c   : > { %v767_v20 = vmul.f32 %v765_v24, %v763_v42  ;;  %v768_v58 = vmul.f32 %v766_v26, %v763_v42 }
 0x14e   : > { %v769_v18 = vadd.f32 %v767_v20, %v759_v17  ;;  %v770_v27 = vadd.f32 %v768_v58, %v760_v46 }
 0x150   : > { %v779_v47 = vadd.f32 %v777_v22, %v769_v18  ;;  %v780_v35 = vadd.f32 %v778_v30, %v770_v27 }
 0x152   : > { %v789_v34 = vadd.f32 %v787_v57, %v779_v47  ;;  %v790_v55 = vadd.f32 %v788_v62, %v780_v35 }
 0x154   : > { %v795_v28 = vpop.permute.xlu1 %794 }
 0x155   : > { %v797_v21 = vadd.f32 %v795_v28, %v789_v34  ;;  %v798_v32 = vadd.f32 %v795_v28, %v790_v55 }
 0x157   : > { %v801_v53 = vmul.f32 0.2, %v797_v21  ;;  %v802_v61 = vmul.f32 0.2, %v798_v32  ;;  %vm799_vm0 = vcmp.gt.f32.partialorder %v797_v21, 0.0  ;;  %vm800_vm1 = vcmp.gt.f32.partialorder %v798_v32, 0.0 }
 0x159   : > { %v803_v10 = vsel %vm799_vm0, %v797_v21, %v801_v53  ;;  %v804_v36 = vsel %vm800_vm1, %v798_v32, %v802_v61 }
 0x15a   : > { %806 = vst [vmem:[%s231_s20 + $0x8] sm:$0xff] %v804_v36  ;;  %v807_v44 = vadd.f32 %v804_v36, %v803_v10  ;;  %v811_v49 = vmul.f32 %v803_v10, %v803_v10  ;;  %v812_v59 = vmul.f32 %v804_v36, %v804_v36 }
 0x15b   : > { %805 = vst [vmem:[%s231_s20] sm:$0xff] %v803_v10 }
 0x15c   : > { %808 = vadd.xlane.f32.xlu2 %v807_v44  ;;  %v813_v39 = vadd.f32 %v812_v59, %v811_v49 }
 0x15e   : > { %814 = vadd.xlane.f32.xlu1 %v813_v39 }
 0x1cf   : > { %v809_v51 = vpop.xlane.xlu2 %808 }
 0x1d0   : > { %810 = vst.msk [vmem:[%s235_s24] sm:$0xff] %vm316_vm2, %v809_v51 }
 0x1d1   : > { %v815_v50 = vpop.xlane.xlu1 %814 }
 0x1d2   : > { %817 = vst.msk [vmem:[%s235_s24] sm:$0xff] %vm816_vm3, %v815_v50 }
 0x1d3 PF: > { %s16_s18 = sadd.s32 1, %s1015_s18  }
 0x1d4   : > { %p13_p4 = scmp.ge.s32.totalorder %s16_s18, 4  }
 0x1d6   :  { %15 = sbr.rel (!%p13_p4) target bundleno = 1 (0x1), region = 79 }

</bundles_post_ra>
